<compile_context>
chip_gen: v7x
topology: tpu7x:2x2x1
jax: 0.10.0
libtpu: 0.0.40
codegen_flags: <defaults>
</compile_context>

<pallas_src>
import jax
import jax.numpy as jnp
from jax import lax
from jax.experimental import pallas as pl
from jax.experimental.pallas import tpu as pltpu


# ------------------------------ fused kernel -------------------------------

def _make_ssem_kernel(H, W, C, C2p):
    N = H * W
    PAD = W + 1                      # covers the largest flat offset |oy*W + ox|
    NT = (((1,), (1,)), ((), ()))    # contract last dims of both operands

    def kernel(x_ref,
               w_head, b_head, w_mb1, b_mb1, w_mb2, b_mb2,
               w_tpg, b_tpg, w_w, b_w, w_ab, b_ab, w_tail, b_tail,
               o_ref):
        x = x_ref[0]                                              # (C, N) f32

        # Column-validity masks for the 3x3 halo (row validity is handled by
        # the zero padding of the flattened buffer); shared by all four convs.
        w_idx = lax.broadcasted_iota(jnp.int32, (1, N), 1) % W
        col_mask = {-1: (w_idx >= 1).astype(jnp.float32),
                    1: (w_idx < (W - 1)).astype(jnp.float32)}

        def conv3x3_relu(a, w_ref, b_ref):
            # a: (C, N) f32, w_ref: (C, 9C) bf16, b_ref: (C, 1) f32
            zp = jnp.zeros((C, PAD), a.dtype)
            ae = jnp.concatenate([zp, a, zp], axis=1)             # (C, N + 2*PAD)
            cols = []
            for oy in (-1, 0, 1):
                for ox in (-1, 0, 1):
                    off = oy * W + ox
                    col = ae[:, PAD + off: PAD + off + N]         # (C, N)
                    if ox != 0:
                        col = col * col_mask[ox]
                    cols.append(col)
            patches = jnp.concatenate(cols, axis=0).astype(jnp.bfloat16)  # (9C, N)
            y = jnp.dot(w_ref[...], patches, preferred_element_type=jnp.float32)
            return jnp.maximum(y + b_ref[...], 0.0)

        # head + MB branch
        x_head = conv3x3_relu(x, w_head, b_head)
        x_mb = conv3x3_relu(x_head, w_mb1, b_mb1)
        x_mb = conv3x3_relu(x_mb, w_mb2, b_mb2)

        # AB branch: NonLocalBlock2D with fused (sublane-padded) theta/phi/g
        # projection.  Padded rows have zero weight & bias so they contribute
        # nothing to the score / value matmuls.
        xh16 = x_head.astype(jnp.bfloat16)
        tpg = jnp.dot(w_tpg[...], xh16,
                      preferred_element_type=jnp.float32) + b_tpg[...]   # (3C2p, N)
        theta_t = tpg[0:C2p].astype(jnp.bfloat16).T               # (N, C2p)
        phi = tpg[C2p:2 * C2p].astype(jnp.bfloat16)               # (C2p, N)
        g = tpg[2 * C2p:3 * C2p].astype(jnp.bfloat16)             # (C2p, N)

        # TODO(synk): for large H*W (especially v7x's 64 MiB VMEM) tile the key
        # axis with online softmax instead of the full (N, N) score matrix.
        f = jnp.dot(theta_t, phi, preferred_element_type=jnp.float32)    # (N, N)
        f = f - jnp.max(f, axis=-1, keepdims=True)
        e = jnp.exp(f)
        attn = e * pl.reciprocal(jnp.sum(e, axis=-1, keepdims=True), approx=True)
        y = lax.dot_general(g, attn.astype(jnp.bfloat16),
                            NT, preferred_element_type=jnp.float32)      # (C2p, N)
        z = (jnp.dot(w_w[...], y.astype(jnp.bfloat16),
                     preferred_element_type=jnp.float32) + b_w[...] + x_head)
        # 1x1 conv + sigmoid gate applied to the MB branch
        s = (jnp.dot(w_ab[...], z.astype(jnp.bfloat16),
                     preferred_element_type=jnp.float32) + b_ab[...])
        ab = pl.reciprocal(1.0 + jnp.exp(-s), approx=True)        # sigmoid (EUP)

        # tail conv + outer residual
        x_tail = conv3x3_relu(x_mb * ab, w_tail, b_tail)
        o_ref[0] = (x + x_tail).astype(o_ref.dtype)

    return kernel


def ssem_forward(x, kp):
    """SSEM forward.  x: (B, C, H, W) float32 (NCHW, as in the PyTorch module)."""
    B, C, H, W = x.shape
    N = H * W
    C2p = kp["w_tpg"].shape[0] // 3        # sublane-padded bottleneck width
    x_flat = x.reshape(B, C, N)

    weights = [kp["w_head"], kp["b_head"], kp["w_mb1"], kp["b_mb1"],
               kp["w_mb2"], kp["b_mb2"], kp["w_tpg"], kp["b_tpg"],
               kp["w_w"], kp["b_w"], kp["w_ab"], kp["b_ab"],
               kp["w_tail"], kp["b_tail"]]

    def full_spec(a):
        return pl.BlockSpec(a.shape, lambda i: (0,) * a.ndim)

    out = pl.pallas_call(
        _make_ssem_kernel(H, W, C, C2p),
        out_shape=jax.ShapeDtypeStruct((B, C, N), x.dtype),
        grid=(B,),
        in_specs=[pl.BlockSpec((1, C, N), lambda i: (i, 0, 0))]
                 + [full_spec(a) for a in weights],
        out_specs=pl.BlockSpec((1, C, N), lambda i: (i, 0, 0)),
        compiler_params=pltpu.CompilerParams(dimension_semantics=("parallel",)),
    )(x_flat, *weights)
    return out.reshape(B, C, H, W)


# ------------------------ kernel-layout parameters --------------------------

def make_kernel_params(p, C, C2):
    C2p = max(8, ((C2 + 7) // 8) * 8)       # sublane-aligned bottleneck width

    def conv9(w_oihw):
        # (Co, Ci, 3, 3) OIHW -> (Co, 9*Ci) matching in-kernel patch order
        # ((ky, kx) outer, ci inner).
        return jnp.transpose(w_oihw, (0, 2, 3, 1)).reshape(w_oihw.shape[0], -1)

    def pad_rows(w, b):
        wp = jnp.zeros((C2p, w.shape[1]), w.dtype).at[:C2].set(w)
        bp = jnp.zeros((C2p,), b.dtype).at[:C2].set(b)
        return wp, bp

    wt, bt = pad_rows(p["w_t"], p["b_t"])
    wph, bph = pad_rows(p["w_p"], p["b_p"])
    wg, bg = pad_rows(p["w_g"], p["b_g"])
    w_w_pad = jnp.zeros((C, C2p), p["w_w"].dtype).at[:, :C2].set(p["w_w"])

    bf16 = lambda a: a.astype(jnp.bfloat16)     # MXU operands in bf16
    col = lambda b: b.reshape(-1, 1)            # biases stay f32, (Co, 1)
    return {
        "w_head": bf16(conv9(p["w_head_oihw"])), "b_head": col(p["b_head"]),
        "w_mb1": bf16(conv9(p["w_mb1_oihw"])), "b_mb1": col(p["b_mb1"]),
        "w_mb2": bf16(conv9(p["w_mb2_oihw"])), "b_mb2": col(p["b_mb2"]),
        "w_tpg": bf16(jnp.concatenate([wt, wph, wg], axis=0)),
        "b_tpg": col(jnp.concatenate([bt, bph, bg])),
        "w_w": bf16(w_w_pad), "b_w": col(p["b_w"]),
        "w_ab": bf16(p["w_ab"]), "b_ab": col(p["b_ab"]),
        "w_tail": bf16(conv9(p["w_tail_oihw"])), "b_tail": col(p["b_tail"]),
    }


# --------------------------- pure-JAX reference ------------------------------

def _conv3x3_ref(x, w, b):
    y = lax.conv_general_dilated(x, w, (1, 1), "SAME",
                                 dimension_numbers=("NCHW", "OIHW", "NCHW"))
    return y + b.reshape(1, -1, 1, 1)


def ssem_reference(x, p):
    B, C, H, W = x.shape
    N = H * W
    relu = lambda a: jnp.maximum(a, 0.0)
    x_head = relu(_conv3x3_ref(x, p["w_head_oihw"], p["b_head"]))
    x_mb = relu(_conv3x3_ref(x_head, p["w_mb1_oihw"], p["b_mb1"]))
    x_mb = relu(_conv3x3_ref(x_mb, p["w_mb2_oihw"], p["b_mb2"]))
    xf = x_head.reshape(B, C, N)
    theta = jnp.einsum("oc,bcn->bon", p["w_t"], xf) + p["b_t"][None, :, None]
    phi = jnp.einsum("oc,bcn->bon", p["w_p"], xf) + p["b_p"][None, :, None]
    g = jnp.einsum("oc,bcn->bon", p["w_g"], xf) + p["b_g"][None, :, None]
    f = jnp.einsum("bcn,bcm->bnm", theta, phi)
    a = jax.nn.softmax(f, axis=-1)
    y = jnp.einsum("bnm,bcm->bcn", a, g)
    z = jnp.einsum("oc,bcn->bon", p["w_w"], y) + p["b_w"][None, :, None] + xf
    ab = jax.nn.sigmoid(jnp.einsum("oc,bcn->bon", p["w_ab"], z)
                        + p["b_ab"][None, :, None])
    x_mb_ab = (x_mb.reshape(B, C, N) * ab).reshape(B, C, H, W)
    x_tail = relu(_conv3x3_ref(x_mb_ab, p["w_tail_oihw"], p["b_tail"]))
    return x + x_tail


# ------------------------------ parameters ----------------------------------

def init_params(key, C, C2):
    ks = jax.random.split(key, 18)

    def w(k, shape, scale=0.1):
        return (scale * jax.random.normal(k, shape)).astype(jnp.float32)

    p = {}
    p["w_head_oihw"] = w(ks[0], (C, C, 3, 3)); p["b_head"] = w(ks[1], (C,))
    p["w_mb1_oihw"] = w(ks[2], (C, C, 3, 3)); p["b_mb1"] = w(ks[3], (C,))
    p["w_mb2_oihw"] = w(ks[4], (C, C, 3, 3)); p["b_mb2"] = w(ks[5], (C,))
    p["w_t"] = w(ks[6], (C2, C)); p["b_t"] = w(ks[7], (C2,))
    p["w_p"] = w(ks[8], (C2, C)); p["b_p"] = w(ks[9], (C2,))
    p["w_g"] = w(ks[10], (C2, C)); p["b_g"] = w(ks[11], (C2,))
    # NOTE: PyTorch NonLocalBlock2D zero-inits W (weight & bias); we use small
    # deterministic random weights so the attention path actually contributes.
    p["w_w"] = w(ks[12], (C, C2)); p["b_w"] = w(ks[13], (C,))
    p["w_ab"] = w(ks[14], (C, C)); p["b_ab"] = w(ks[15], (C,))
    p["w_tail_oihw"] = w(ks[16], (C, C, 3, 3)); p["b_tail"] = w(ks[17], (C,))
    return p


# --------------------------------- main --------------------------------------

if __name__ == "__main__":
    B, C, H, W = 2, 8, 16, 16          # n_feats = 8, kernel_size = 3, 16x16 spatial
    C2 = C // 2
    key = jax.random.PRNGKey(0)
    kx, kparam = jax.random.split(key)
    x = jax.random.normal(kx, (B, C, H, W), dtype=jnp.float32)
    params = init_params(kparam, C, C2)
    kparams = make_kernel_params(params, C, C2)

    out = jax.block_until_ready(ssem_forward(x, kparams))
    ref = jax.block_until_ready(ssem_reference(x, params))

    assert out.shape == (B, C, H, W), out.shape
    err = float(jnp.max(jnp.abs(out - ref)))
    # Kernel uses bf16 MXU operands (f32 accumulation) and approx EUP
    # reciprocals, while the XLA reference is full f32 -> bf16-sized tolerance.
    assert err < 1e-1, f"max abs error too large: {err}"
    print("KERNEL_OK")
</pallas_src>

<mosaic_0001>
module attributes {stable_mosaic.version = 11 : i64} {
  func.func @kernel(%arg0: i32, %arg1: memref<1x8x256xf32, #tpu.memory_space<vmem>>, %arg2: memref<8x72xbf16, #tpu.memory_space<vmem>>, %arg3: memref<8x1xf32, #tpu.memory_space<vmem>>, %arg4: memref<8x72xbf16, #tpu.memory_space<vmem>>, %arg5: memref<8x1xf32, #tpu.memory_space<vmem>>, %arg6: memref<8x72xbf16, #tpu.memory_space<vmem>>, %arg7: memref<8x1xf32, #tpu.memory_space<vmem>>, %arg8: memref<24x8xbf16, #tpu.memory_space<vmem>>, %arg9: memref<24x1xf32, #tpu.memory_space<vmem>>, %arg10: memref<8x8xbf16, #tpu.memory_space<vmem>>, %arg11: memref<8x1xf32, #tpu.memory_space<vmem>>, %arg12: memref<8x8xbf16, #tpu.memory_space<vmem>>, %arg13: memref<8x1xf32, #tpu.memory_space<vmem>>, %arg14: memref<8x72xbf16, #tpu.memory_space<vmem>>, %arg15: memref<8x1xf32, #tpu.memory_space<vmem>>, %arg16: memref<1x8x256xf32, #tpu.memory_space<vmem>>) attributes {dimension_semantics = [#tpu.dimension_semantics<parallel>], iteration_bounds = array<i64: 2>, scalar_prefetch = 0 : i64, scratch_operands = 0 : i64, tpu.core_type = #tpu.core_type<tc>, window_params = [{transform_indices = @transform_0, window_bounds = array<i64: 1, 8, 256>}, {pipeline_mode = #tpu.pipeline_mode<synchronous>, transform_indices = @transform_1, window_bounds = array<i64: 8, 72>}, {pipeline_mode = #tpu.pipeline_mode<synchronous>, transform_indices = @transform_2, window_bounds = array<i64: 8, 1>}, {pipeline_mode = #tpu.pipeline_mode<synchronous>, transform_indices = @transform_3, window_bounds = array<i64: 8, 72>}, {pipeline_mode = #tpu.pipeline_mode<synchronous>, transform_indices = @transform_4, window_bounds = array<i64: 8, 1>}, {pipeline_mode = #tpu.pipeline_mode<synchronous>, transform_indices = @transform_5, window_bounds = array<i64: 8, 72>}, {pipeline_mode = #tpu.pipeline_mode<synchronous>, transform_indices = @transform_6, window_bounds = array<i64: 8, 1>}, {pipeline_mode = #tpu.pipeline_mode<synchronous>, transform_indices = @transform_7, window_bounds = array<i64: 24, 8>}, {pipeline_mode = #tpu.pipeline_mode<synchronous>, transform_indices = @transform_8, window_bounds = array<i64: 24, 1>}, {pipeline_mode = #tpu.pipeline_mode<synchronous>, transform_indices = @transform_9, window_bounds = array<i64: 8, 8>}, {pipeline_mode = #tpu.pipeline_mode<synchronous>, transform_indices = @transform_10, window_bounds = array<i64: 8, 1>}, {pipeline_mode = #tpu.pipeline_mode<synchronous>, transform_indices = @transform_11, window_bounds = array<i64: 8, 8>}, {pipeline_mode = #tpu.pipeline_mode<synchronous>, transform_indices = @transform_12, window_bounds = array<i64: 8, 1>}, {pipeline_mode = #tpu.pipeline_mode<synchronous>, transform_indices = @transform_13, window_bounds = array<i64: 8, 72>}, {pipeline_mode = #tpu.pipeline_mode<synchronous>, transform_indices = @transform_14, window_bounds = array<i64: 8, 1>}, {transform_indices = @transform_15, window_bounds = array<i64: 1, 8, 256>}]} {
    %c0 = arith.constant 0 : index
    %c0_0 = arith.constant 0 : index
    %c0_1 = arith.constant 0 : index
    %0 = vector.load %arg1[%c0, %c0_0, %c0_1] : memref<1x8x256xf32, #tpu.memory_space<vmem>>, vector<1x8x256xf32>
    %1 = vector.shape_cast %0 : vector<1x8x256xf32> to vector<8x256xf32>
    %2 = tpu.iota {dimensions = array<i32: 1>} : vector<1x256xi32>
    %c16_i32 = arith.constant 16 : i32
    %c0_i32 = arith.constant 0 : i32
    %3 = arith.cmpi eq, %c16_i32, %c0_i32 : i32
    %c1_i32 = arith.constant 1 : i32
    %4 = arith.select %3, %c1_i32, %c16_i32 : i32
    %5 = vector.broadcast %4 : i32 to vector<1x256xi32>
    %6 = arith.remsi %2, %5 : vector<1x256xi32>
    %c0_i32_2 = arith.constant 0 : i32
    %7 = vector.broadcast %c0_i32_2 : i32 to vector<1x256xi32>
    %8 = arith.cmpi ne, %6, %7 : vector<1x256xi32>
    %c0_i32_3 = arith.constant 0 : i32
    %9 = vector.broadcast %c0_i32_3 : i32 to vector<1x256xi32>
    %10 = arith.cmpi slt, %6, %9 : vector<1x256xi32>
    %c0_i32_4 = arith.constant 0 : i32
    %11 = arith.cmpi slt, %4, %c0_i32_4 : i32
    %12 = vector.broadcast %11 : i1 to vector<1x256xi1>
    %13 = vector.broadcast %12 : vector<1x256xi1> to vector<1x256xi1>
    %14 = arith.xori %10, %13 : vector<1x256xi1>
    %15 = arith.andi %14, %8 : vector<1x256xi1>
    %16 = vector.broadcast %4 : i32 to vector<1x256xi32>
    %17 = arith.addi %6, %16 : vector<1x256xi32>
    %18 = arith.select %15, %17, %6 : vector<1x256xi1>, vector<1x256xi32>
    %c1_i32_5 = arith.constant 1 : i32
    %19 = vector.broadcast %c1_i32_5 : i32 to vector<1x256xi32>
    %20 = arith.cmpi sge, %18, %19 : vector<1x256xi32>
    %21 = arith.extui %20 : vector<1x256xi1> to vector<1x256xi32>
    %22 = arith.sitofp %21 : vector<1x256xi32> to vector<1x256xf32>
    %c15_i32 = arith.constant 15 : i32
    %23 = vector.broadcast %c15_i32 : i32 to vector<1x256xi32>
    %24 = arith.cmpi slt, %18, %23 : vector<1x256xi32>
    %25 = arith.extui %24 : vector<1x256xi1> to vector<1x256xi32>
    %26 = arith.sitofp %25 : vector<1x256xi32> to vector<1x256xf32>
    %cst = arith.constant 0.000000e+00 : f32
    %27 = vector.broadcast %cst : f32 to vector<8x17xf32>
    %28 = tpu.concatenate %27, %1, %27 in 1 : vector<8x17xf32>, vector<8x256xf32>, vector<8x17xf32> -> vector<8x290xf32>
    %29 = vector.extract_strided_slice %28 {offsets = [0, 0], sizes = [8, 256], strides = [1, 1]} : vector<8x290xf32> to vector<8x256xf32>
    %30 = vector.broadcast %22 : vector<1x256xf32> to vector<8x256xf32>
    %31 = arith.mulf %29, %30 : vector<8x256xf32>
    %32 = vector.extract_strided_slice %28 {offsets = [0, 1], sizes = [8, 256], strides = [1, 1]} : vector<8x290xf32> to vector<8x256xf32>
    %33 = vector.extract_strided_slice %28 {offsets = [0, 2], sizes = [8, 256], strides = [1, 1]} : vector<8x290xf32> to vector<8x256xf32>
    %34 = vector.broadcast %26 : vector<1x256xf32> to vector<8x256xf32>
    %35 = arith.mulf %33, %34 : vector<8x256xf32>
    %36 = vector.extract_strided_slice %28 {offsets = [0, 16], sizes = [8, 256], strides = [1, 1]} : vector<8x290xf32> to vector<8x256xf32>
    %37 = vector.broadcast %22 : vector<1x256xf32> to vector<8x256xf32>
    %38 = arith.mulf %36, %37 : vector<8x256xf32>
    %39 = vector.extract_strided_slice %28 {offsets = [0, 17], sizes = [8, 256], strides = [1, 1]} : vector<8x290xf32> to vector<8x256xf32>
    %40 = vector.extract_strided_slice %28 {offsets = [0, 18], sizes = [8, 256], strides = [1, 1]} : vector<8x290xf32> to vector<8x256xf32>
    %41 = vector.broadcast %26 : vector<1x256xf32> to vector<8x256xf32>
    %42 = arith.mulf %40, %41 : vector<8x256xf32>
    %43 = vector.extract_strided_slice %28 {offsets = [0, 32], sizes = [8, 256], strides = [1, 1]} : vector<8x290xf32> to vector<8x256xf32>
    %44 = vector.broadcast %22 : vector<1x256xf32> to vector<8x256xf32>
    %45 = arith.mulf %43, %44 : vector<8x256xf32>
    %46 = vector.extract_strided_slice %28 {offsets = [0, 33], sizes = [8, 256], strides = [1, 1]} : vector<8x290xf32> to vector<8x256xf32>
    %47 = vector.extract_strided_slice %28 {offsets = [0, 34], sizes = [8, 256], strides = [1, 1]} : vector<8x290xf32> to vector<8x256xf32>
    %48 = vector.broadcast %26 : vector<1x256xf32> to vector<8x256xf32>
    %49 = arith.mulf %47, %48 : vector<8x256xf32>
    %50 = tpu.concatenate %31, %32, %35, %38, %39, %42, %45, %46, %49 in 0 : vector<8x256xf32>, vector<8x256xf32>, vector<8x256xf32>, vector<8x256xf32>, vector<8x256xf32>, vector<8x256xf32>, vector<8x256xf32>, vector<8x256xf32>, vector<8x256xf32> -> vector<72x256xf32>
    %51 = arith.truncf %50 : vector<72x256xf32> to vector<72x256xbf16>
    %c0_6 = arith.constant 0 : index
    %c0_7 = arith.constant 0 : index
    %52 = vector.load %arg2[%c0_6, %c0_7] : memref<8x72xbf16, #tpu.memory_space<vmem>>, vector<8x72xbf16>
    %cst_8 = arith.constant dense<0.000000e+00> : vector<8x256xf32>
    %53 = tpu.matmul %52, %51, %cst_8 {dimension_numbers = #tpu.dot_dimension_numbers<[1], [0], [0], [1], [0, 0, 1, 1], [], []>} : vector<8x72xbf16>, vector<72x256xbf16>, vector<8x256xf32> -> vector<8x256xf32>
    %c0_9 = arith.constant 0 : index
    %c0_10 = arith.constant 0 : index
    %54 = vector.load %arg3[%c0_9, %c0_10] : memref<8x1xf32, #tpu.memory_space<vmem>>, vector<8x1xf32>
    %55 = vector.broadcast %54 : vector<8x1xf32> to vector<8x256xf32>
    %56 = arith.addf %53, %55 : vector<8x256xf32>
    %cst_11 = arith.constant 0.000000e+00 : f32
    %57 = vector.broadcast %cst_11 : f32 to vector<8x256xf32>
    %58 = arith.maximumf %56, %57 : vector<8x256xf32>
    %cst_12 = arith.constant 0.000000e+00 : f32
    %59 = vector.broadcast %cst_12 : f32 to vector<8x17xf32>
    %60 = tpu.concatenate %59, %58, %59 in 1 : vector<8x17xf32>, vector<8x256xf32>, vector<8x17xf32> -> vector<8x290xf32>
    %61 = vector.extract_strided_slice %60 {offsets = [0, 0], sizes = [8, 256], strides = [1, 1]} : vector<8x290xf32> to vector<8x256xf32>
    %62 = vector.broadcast %22 : vector<1x256xf32> to vector<8x256xf32>
    %63 = arith.mulf %61, %62 : vector<8x256xf32>
    %64 = vector.extract_strided_slice %60 {offsets = [0, 1], sizes = [8, 256], strides = [1, 1]} : vector<8x290xf32> to vector<8x256xf32>
    %65 = vector.extract_strided_slice %60 {offsets = [0, 2], sizes = [8, 256], strides = [1, 1]} : vector<8x290xf32> to vector<8x256xf32>
    %66 = vector.broadcast %26 : vector<1x256xf32> to vector<8x256xf32>
    %67 = arith.mulf %65, %66 : vector<8x256xf32>
    %68 = vector.extract_strided_slice %60 {offsets = [0, 16], sizes = [8, 256], strides = [1, 1]} : vector<8x290xf32> to vector<8x256xf32>
    %69 = vector.broadcast %22 : vector<1x256xf32> to vector<8x256xf32>
    %70 = arith.mulf %68, %69 : vector<8x256xf32>
    %71 = vector.extract_strided_slice %60 {offsets = [0, 17], sizes = [8, 256], strides = [1, 1]} : vector<8x290xf32> to vector<8x256xf32>
    %72 = vector.extract_strided_slice %60 {offsets = [0, 18], sizes = [8, 256], strides = [1, 1]} : vector<8x290xf32> to vector<8x256xf32>
    %73 = vector.broadcast %26 : vector<1x256xf32> to vector<8x256xf32>
    %74 = arith.mulf %72, %73 : vector<8x256xf32>
    %75 = vector.extract_strided_slice %60 {offsets = [0, 32], sizes = [8, 256], strides = [1, 1]} : vector<8x290xf32> to vector<8x256xf32>
    %76 = vector.broadcast %22 : vector<1x256xf32> to vector<8x256xf32>
    %77 = arith.mulf %75, %76 : vector<8x256xf32>
    %78 = vector.extract_strided_slice %60 {offsets = [0, 33], sizes = [8, 256], strides = [1, 1]} : vector<8x290xf32> to vector<8x256xf32>
    %79 = vector.extract_strided_slice %60 {offsets = [0, 34], sizes = [8, 256], strides = [1, 1]} : vector<8x290xf32> to vector<8x256xf32>
    %80 = vector.broadcast %26 : vector<1x256xf32> to vector<8x256xf32>
    %81 = arith.mulf %79, %80 : vector<8x256xf32>
    %82 = tpu.concatenate %63, %64, %67, %70, %71, %74, %77, %78, %81 in 0 : vector<8x256xf32>, vector<8x256xf32>, vector<8x256xf32>, vector<8x256xf32>, vector<8x256xf32>, vector<8x256xf32>, vector<8x256xf32>, vector<8x256xf32>, vector<8x256xf32> -> vector<72x256xf32>
    %83 = arith.truncf %82 : vector<72x256xf32> to vector<72x256xbf16>
    %c0_13 = arith.constant 0 : index
    %c0_14 = arith.constant 0 : index
    %84 = vector.load %arg4[%c0_13, %c0_14] : memref<8x72xbf16, #tpu.memory_space<vmem>>, vector<8x72xbf16>
    %cst_15 = arith.constant dense<0.000000e+00> : vector<8x256xf32>
    %85 = tpu.matmul %84, %83, %cst_15 {dimension_numbers = #tpu.dot_dimension_numbers<[1], [0], [0], [1], [0, 0, 1, 1], [], []>} : vector<8x72xbf16>, vector<72x256xbf16>, vector<8x256xf32> -> vector<8x256xf32>
    %c0_16 = arith.constant 0 : index
    %c0_17 = arith.constant 0 : index
    %86 = vector.load %arg5[%c0_16, %c0_17] : memref<8x1xf32, #tpu.memory_space<vmem>>, vector<8x1xf32>
    %87 = vector.broadcast %86 : vector<8x1xf32> to vector<8x256xf32>
    %88 = arith.addf %85, %87 : vector<8x256xf32>
    %cst_18 = arith.constant 0.000000e+00 : f32
    %89 = vector.broadcast %cst_18 : f32 to vector<8x256xf32>
    %90 = arith.maximumf %88, %89 : vector<8x256xf32>
    %cst_19 = arith.constant 0.000000e+00 : f32
    %91 = vector.broadcast %cst_19 : f32 to vector<8x17xf32>
    %92 = tpu.concatenate %91, %90, %91 in 1 : vector<8x17xf32>, vector<8x256xf32>, vector<8x17xf32> -> vector<8x290xf32>
    %93 = vector.extract_strided_slice %92 {offsets = [0, 0], sizes = [8, 256], strides = [1, 1]} : vector<8x290xf32> to vector<8x256xf32>
    %94 = vector.broadcast %22 : vector<1x256xf32> to vector<8x256xf32>
    %95 = arith.mulf %93, %94 : vector<8x256xf32>
    %96 = vector.extract_strided_slice %92 {offsets = [0, 1], sizes = [8, 256], strides = [1, 1]} : vector<8x290xf32> to vector<8x256xf32>
    %97 = vector.extract_strided_slice %92 {offsets = [0, 2], sizes = [8, 256], strides = [1, 1]} : vector<8x290xf32> to vector<8x256xf32>
    %98 = vector.broadcast %26 : vector<1x256xf32> to vector<8x256xf32>
    %99 = arith.mulf %97, %98 : vector<8x256xf32>
    %100 = vector.extract_strided_slice %92 {offsets = [0, 16], sizes = [8, 256], strides = [1, 1]} : vector<8x290xf32> to vector<8x256xf32>
    %101 = vector.broadcast %22 : vector<1x256xf32> to vector<8x256xf32>
    %102 = arith.mulf %100, %101 : vector<8x256xf32>
    %103 = vector.extract_strided_slice %92 {offsets = [0, 17], sizes = [8, 256], strides = [1, 1]} : vector<8x290xf32> to vector<8x256xf32>
    %104 = vector.extract_strided_slice %92 {offsets = [0, 18], sizes = [8, 256], strides = [1, 1]} : vector<8x290xf32> to vector<8x256xf32>
    %105 = vector.broadcast %26 : vector<1x256xf32> to vector<8x256xf32>
    %106 = arith.mulf %104, %105 : vector<8x256xf32>
    %107 = vector.extract_strided_slice %92 {offsets = [0, 32], sizes = [8, 256], strides = [1, 1]} : vector<8x290xf32> to vector<8x256xf32>
    %108 = vector.broadcast %22 : vector<1x256xf32> to vector<8x256xf32>
    %109 = arith.mulf %107, %108 : vector<8x256xf32>
    %110 = vector.extract_strided_slice %92 {offsets = [0, 33], sizes = [8, 256], strides = [1, 1]} : vector<8x290xf32> to vector<8x256xf32>
    %111 = vector.extract_strided_slice %92 {offsets = [0, 34], sizes = [8, 256], strides = [1, 1]} : vector<8x290xf32> to vector<8x256xf32>
    %112 = vector.broadcast %26 : vector<1x256xf32> to vector<8x256xf32>
    %113 = arith.mulf %111, %112 : vector<8x256xf32>
    %114 = tpu.concatenate %95, %96, %99, %102, %103, %106, %109, %110, %113 in 0 : vector<8x256xf32>, vector<8x256xf32>, vector<8x256xf32>, vector<8x256xf32>, vector<8x256xf32>, vector<8x256xf32>, vector<8x256xf32>, vector<8x256xf32>, vector<8x256xf32> -> vector<72x256xf32>
    %115 = arith.truncf %114 : vector<72x256xf32> to vector<72x256xbf16>
    %c0_20 = arith.constant 0 : index
    %c0_21 = arith.constant 0 : index
    %116 = vector.load %arg6[%c0_20, %c0_21] : memref<8x72xbf16, #tpu.memory_space<vmem>>, vector<8x72xbf16>
    %cst_22 = arith.constant dense<0.000000e+00> : vector<8x256xf32>
    %117 = tpu.matmul %116, %115, %cst_22 {dimension_numbers = #tpu.dot_dimension_numbers<[1], [0], [0], [1], [0, 0, 1, 1], [], []>} : vector<8x72xbf16>, vector<72x256xbf16>, vector<8x256xf32> -> vector<8x256xf32>
    %c0_23 = arith.constant 0 : index
    %c0_24 = arith.constant 0 : index
    %118 = vector.load %arg7[%c0_23, %c0_24] : memref<8x1xf32, #tpu.memory_space<vmem>>, vector<8x1xf32>
    %119 = vector.broadcast %118 : vector<8x1xf32> to vector<8x256xf32>
    %120 = arith.addf %117, %119 : vector<8x256xf32>
    %cst_25 = arith.constant 0.000000e+00 : f32
    %121 = vector.broadcast %cst_25 : f32 to vector<8x256xf32>
    %122 = arith.maximumf %120, %121 : vector<8x256xf32>
    %123 = arith.truncf %58 : vector<8x256xf32> to vector<8x256xbf16>
    %c0_26 = arith.constant 0 : index
    %c0_27 = arith.constant 0 : index
    %124 = vector.load %arg8[%c0_26, %c0_27] : memref<24x8xbf16, #tpu.memory_space<vmem>>, vector<24x8xbf16>
    %cst_28 = arith.constant dense<0.000000e+00> : vector<24x256xf32>
    %125 = tpu.matmul %124, %123, %cst_28 {dimension_numbers = #tpu.dot_dimension_numbers<[1], [0], [0], [1], [0, 0, 1, 1], [], []>} : vector<24x8xbf16>, vector<8x256xbf16>, vector<24x256xf32> -> vector<24x256xf32>
    %c0_29 = arith.constant 0 : index
    %c0_30 = arith.constant 0 : index
    %126 = vector.load %arg9[%c0_29, %c0_30] : memref<24x1xf32, #tpu.memory_space<vmem>>, vector<24x1xf32>
    %127 = vector.broadcast %126 : vector<24x1xf32> to vector<24x256xf32>
    %128 = arith.addf %125, %127 : vector<24x256xf32>
    %129 = vector.extract_strided_slice %128 {offsets = [0, 0], sizes = [8, 256], strides = [1, 1]} : vector<24x256xf32> to vector<8x256xf32>
    %130 = arith.truncf %129 : vector<8x256xf32> to vector<8x256xbf16>
    %131 = tpu.transpose %130, [1, 0] : vector<8x256xbf16> -> vector<256x8xbf16>
    %132 = vector.extract_strided_slice %128 {offsets = [8, 0], sizes = [8, 256], strides = [1, 1]} : vector<24x256xf32> to vector<8x256xf32>
    %133 = arith.truncf %132 : vector<8x256xf32> to vector<8x256xbf16>
    %134 = vector.extract_strided_slice %128 {offsets = [16, 0], sizes = [8, 256], strides = [1, 1]} : vector<24x256xf32> to vector<8x256xf32>
    %135 = arith.truncf %134 : vector<8x256xf32> to vector<8x256xbf16>
    %cst_31 = arith.constant dense<0.000000e+00> : vector<256x256xf32>
    %136 = tpu.matmul %131, %133, %cst_31 {dimension_numbers = #tpu.dot_dimension_numbers<[1], [0], [0], [1], [0, 0, 1, 1], [], []>} : vector<256x8xbf16>, vector<8x256xbf16>, vector<256x256xf32> -> vector<256x256xf32>
    %cst_32 = arith.constant dense<0xFF800000> : vector<256xf32>
    %137 = vector.multi_reduction <maximumf>, %136, %cst_32 [1] : vector<256x256xf32> to vector<256xf32>
    %138 = vector.shape_cast %137 : vector<256xf32> to vector<256x1xf32>
    %139 = vector.broadcast %138 : vector<256x1xf32> to vector<256x256xf32>
    %140 = arith.subf %136, %139 : vector<256x256xf32>
    %141 = math.exp %140 : vector<256x256xf32>
    %cst_33 = arith.constant dense<0.000000e+00> : vector<256xf32>
    %142 = vector.multi_reduction <add>, %141, %cst_33 [1] : vector<256x256xf32> to vector<256xf32>
    %143 = vector.shape_cast %142 : vector<256xf32> to vector<256x1xf32>
    %144 = tpu.reciprocal %143 {approx = true} : vector<256x1xf32> -> vector<256x1xf32>
    %145 = vector.broadcast %144 : vector<256x1xf32> to vector<256x256xf32>
    %146 = arith.mulf %141, %145 : vector<256x256xf32>
    %147 = arith.truncf %146 : vector<256x256xf32> to vector<256x256xbf16>
    %cst_34 = arith.constant dense<0.000000e+00> : vector<8x256xf32>
    %148 = tpu.matmul %135, %147, %cst_34 {dimension_numbers = #tpu.dot_dimension_numbers<[1], [1], [0], [0], [0, 0, 1, 0], [], []>} : vector<8x256xbf16>, vector<256x256xbf16>, vector<8x256xf32> -> vector<8x256xf32>
    %c0_35 = arith.constant 0 : index
    %c0_36 = arith.constant 0 : index
    %149 = vector.load %arg10[%c0_35, %c0_36] : memref<8x8xbf16, #tpu.memory_space<vmem>>, vector<8x8xbf16>
    %150 = arith.truncf %148 : vector<8x256xf32> to vector<8x256xbf16>
    %cst_37 = arith.constant dense<0.000000e+00> : vector<8x256xf32>
    %151 = tpu.matmul %149, %150, %cst_37 {dimension_numbers = #tpu.dot_dimension_numbers<[1], [0], [0], [1], [0, 0, 1, 1], [], []>} : vector<8x8xbf16>, vector<8x256xbf16>, vector<8x256xf32> -> vector<8x256xf32>
    %c0_38 = arith.constant 0 : index
    %c0_39 = arith.constant 0 : index
    %152 = vector.load %arg11[%c0_38, %c0_39] : memref<8x1xf32, #tpu.memory_space<vmem>>, vector<8x1xf32>
    %153 = vector.broadcast %152 : vector<8x1xf32> to vector<8x256xf32>
    %154 = arith.addf %151, %153 : vector<8x256xf32>
    %155 = arith.addf %154, %58 : vector<8x256xf32>
    %c0_40 = arith.constant 0 : index
    %c0_41 = arith.constant 0 : index
    %156 = vector.load %arg12[%c0_40, %c0_41] : memref<8x8xbf16, #tpu.memory_space<vmem>>, vector<8x8xbf16>
    %157 = arith.truncf %155 : vector<8x256xf32> to vector<8x256xbf16>
    %cst_42 = arith.constant dense<0.000000e+00> : vector<8x256xf32>
    %158 = tpu.matmul %156, %157, %cst_42 {dimension_numbers = #tpu.dot_dimension_numbers<[1], [0], [0], [1], [0, 0, 1, 1], [], []>} : vector<8x8xbf16>, vector<8x256xbf16>, vector<8x256xf32> -> vector<8x256xf32>
    %c0_43 = arith.constant 0 : index
    %c0_44 = arith.constant 0 : index
    %159 = vector.load %arg13[%c0_43, %c0_44] : memref<8x1xf32, #tpu.memory_space<vmem>>, vector<8x1xf32>
    %160 = vector.broadcast %159 : vector<8x1xf32> to vector<8x256xf32>
    %161 = arith.addf %158, %160 : vector<8x256xf32>
    %cst_45 = arith.constant 0.000000e+00 : f32
    %162 = vector.broadcast %cst_45 : f32 to vector<8x256xf32>
    %163 = arith.subf %162, %161 : vector<8x256xf32>
    %164 = math.exp %163 : vector<8x256xf32>
    %cst_46 = arith.constant 1.000000e+00 : f32
    %165 = vector.broadcast %cst_46 : f32 to vector<8x256xf32>
    %166 = arith.addf %165, %164 : vector<8x256xf32>
    %167 = tpu.reciprocal %166 {approx = true} : vector<8x256xf32> -> vector<8x256xf32>
    %168 = arith.mulf %122, %167 : vector<8x256xf32>
    %cst_47 = arith.constant 0.000000e+00 : f32
    %169 = vector.broadcast %cst_47 : f32 to vector<8x17xf32>
    %170 = tpu.concatenate %169, %168, %169 in 1 : vector<8x17xf32>, vector<8x256xf32>, vector<8x17xf32> -> vector<8x290xf32>
    %171 = vector.extract_strided_slice %170 {offsets = [0, 0], sizes = [8, 256], strides = [1, 1]} : vector<8x290xf32> to vector<8x256xf32>
    %172 = vector.broadcast %22 : vector<1x256xf32> to vector<8x256xf32>
    %173 = arith.mulf %171, %172 : vector<8x256xf32>
    %174 = vector.extract_strided_slice %170 {offsets = [0, 1], sizes = [8, 256], strides = [1, 1]} : vector<8x290xf32> to vector<8x256xf32>
    %175 = vector.extract_strided_slice %170 {offsets = [0, 2], sizes = [8, 256], strides = [1, 1]} : vector<8x290xf32> to vector<8x256xf32>
    %176 = vector.broadcast %26 : vector<1x256xf32> to vector<8x256xf32>
    %177 = arith.mulf %175, %176 : vector<8x256xf32>
    %178 = vector.extract_strided_slice %170 {offsets = [0, 16], sizes = [8, 256], strides = [1, 1]} : vector<8x290xf32> to vector<8x256xf32>
    %179 = vector.broadcast %22 : vector<1x256xf32> to vector<8x256xf32>
    %180 = arith.mulf %178, %179 : vector<8x256xf32>
    %181 = vector.extract_strided_slice %170 {offsets = [0, 17], sizes = [8, 256], strides = [1, 1]} : vector<8x290xf32> to vector<8x256xf32>
    %182 = vector.extract_strided_slice %170 {offsets = [0, 18], sizes = [8, 256], strides = [1, 1]} : vector<8x290xf32> to vector<8x256xf32>
    %183 = vector.broadcast %26 : vector<1x256xf32> to vector<8x256xf32>
    %184 = arith.mulf %182, %183 : vector<8x256xf32>
    %185 = vector.extract_strided_slice %170 {offsets = [0, 32], sizes = [8, 256], strides = [1, 1]} : vector<8x290xf32> to vector<8x256xf32>
    %186 = vector.broadcast %22 : vector<1x256xf32> to vector<8x256xf32>
    %187 = arith.mulf %185, %186 : vector<8x256xf32>
    %188 = vector.extract_strided_slice %170 {offsets = [0, 33], sizes = [8, 256], strides = [1, 1]} : vector<8x290xf32> to vector<8x256xf32>
    %189 = vector.extract_strided_slice %170 {offsets = [0, 34], sizes = [8, 256], strides = [1, 1]} : vector<8x290xf32> to vector<8x256xf32>
    %190 = vector.broadcast %26 : vector<1x256xf32> to vector<8x256xf32>
    %191 = arith.mulf %189, %190 : vector<8x256xf32>
    %192 = tpu.concatenate %173, %174, %177, %180, %181, %184, %187, %188, %191 in 0 : vector<8x256xf32>, vector<8x256xf32>, vector<8x256xf32>, vector<8x256xf32>, vector<8x256xf32>, vector<8x256xf32>, vector<8x256xf32>, vector<8x256xf32>, vector<8x256xf32> -> vector<72x256xf32>
    %193 = arith.truncf %192 : vector<72x256xf32> to vector<72x256xbf16>
    %c0_48 = arith.constant 0 : index
    %c0_49 = arith.constant 0 : index
    %194 = vector.load %arg14[%c0_48, %c0_49] : memref<8x72xbf16, #tpu.memory_space<vmem>>, vector<8x72xbf16>
    %cst_50 = arith.constant dense<0.000000e+00> : vector<8x256xf32>
    %195 = tpu.matmul %194, %193, %cst_50 {dimension_numbers = #tpu.dot_dimension_numbers<[1], [0], [0], [1], [0, 0, 1, 1], [], []>} : vector<8x72xbf16>, vector<72x256xbf16>, vector<8x256xf32> -> vector<8x256xf32>
    %c0_51 = arith.constant 0 : index
    %c0_52 = arith.constant 0 : index
    %196 = vector.load %arg15[%c0_51, %c0_52] : memref<8x1xf32, #tpu.memory_space<vmem>>, vector<8x1xf32>
    %197 = vector.broadcast %196 : vector<8x1xf32> to vector<8x256xf32>
    %198 = arith.addf %195, %197 : vector<8x256xf32>
    %cst_53 = arith.constant 0.000000e+00 : f32
    %199 = vector.broadcast %cst_53 : f32 to vector<8x256xf32>
    %200 = arith.maximumf %198, %199 : vector<8x256xf32>
    %201 = arith.addf %1, %200 : vector<8x256xf32>
    %c0_54 = arith.constant 0 : index
    %c0_55 = arith.constant 0 : index
    %c0_56 = arith.constant 0 : index
    %202 = vector.load %arg16[%c0_54, %c0_55, %c0_56] : memref<1x8x256xf32, #tpu.memory_space<vmem>>, vector<1x8x256xf32>
    %203 = vector.shape_cast %202 : vector<1x8x256xf32> to vector<8x256xf32>
    %204 = vector.shape_cast %201 : vector<8x256xf32> to vector<1x8x256xf32>
    tpu.vector_store %arg16[%c0_54, %c0_55, %c0_56], %204 {strides = array<i32>} : memref<1x8x256xf32, #tpu.memory_space<vmem>>, vector<1x8x256xf32>,
    return
  }
  func.func @transform_0(%arg0: i32) -> (i32, i32, i32) {
    %c0_i32 = arith.constant 0 : i32
    %c0_i32_0 = arith.constant 0 : i32
    %c0_i32_1 = arith.constant 0 : i32
    return %arg0, %c0_i32, %c0_i32_0 : i32, i32, i32
  }
  func.func @transform_1(%arg0: i32) -> (i32, i32) {
    %c0_i32 = arith.constant 0 : i32
    %c0_i32_0 = arith.constant 0 : i32
    %c0_i32_1 = arith.constant 0 : i32
    return %c0_i32, %c0_i32_0 : i32, i32
  }
  func.func @transform_2(%arg0: i32) -> (i32, i32) {
    %c0_i32 = arith.constant 0 : i32
    %c0_i32_0 = arith.constant 0 : i32
    %c0_i32_1 = arith.constant 0 : i32
    return %c0_i32, %c0_i32_0 : i32, i32
  }
  func.func @transform_3(%arg0: i32) -> (i32, i32) {
    %c0_i32 = arith.constant 0 : i32
    %c0_i32_0 = arith.constant 0 : i32
    %c0_i32_1 = arith.constant 0 : i32
    return %c0_i32, %c0_i32_0 : i32, i32
  }
  func.func @transform_4(%arg0: i32) -> (i32, i32) {
    %c0_i32 = arith.constant 0 : i32
    %c0_i32_0 = arith.constant 0 : i32
    %c0_i32_1 = arith.constant 0 : i32
    return %c0_i32, %c0_i32_0 : i32, i32
  }
  func.func @transform_5(%arg0: i32) -> (i32, i32) {
    %c0_i32 = arith.constant 0 : i32
    %c0_i32_0 = arith.constant 0 : i32
    %c0_i32_1 = arith.constant 0 : i32
    return %c0_i32, %c0_i32_0 : i32, i32
  }
  func.func @transform_6(%arg0: i32) -> (i32, i32) {
    %c0_i32 = arith.constant 0 : i32
    %c0_i32_0 = arith.constant 0 : i32
    %c0_i32_1 = arith.constant 0 : i32
    return %c0_i32, %c0_i32_0 : i32, i32
  }
  func.func @transform_7(%arg0: i32) -> (i32, i32) {
    %c0_i32 = arith.constant 0 : i32
    %c0_i32_0 = arith.constant 0 : i32
    %c0_i32_1 = arith.constant 0 : i32
    return %c0_i32, %c0_i32_0 : i32, i32
  }
  func.func @transform_8(%arg0: i32) -> (i32, i32) {
    %c0_i32 = arith.constant 0 : i32
    %c0_i32_0 = arith.constant 0 : i32
    %c0_i32_1 = arith.constant 0 : i32
    return %c0_i32, %c0_i32_0 : i32, i32
  }
  func.func @transform_9(%arg0: i32) -> (i32, i32) {
    %c0_i32 = arith.constant 0 : i32
    %c0_i32_0 = arith.constant 0 : i32
    %c0_i32_1 = arith.constant 0 : i32
    return %c0_i32, %c0_i32_0 : i32, i32
  }
  func.func @transform_10(%arg0: i32) -> (i32, i32) {
    %c0_i32 = arith.constant 0 : i32
    %c0_i32_0 = arith.constant 0 : i32
    %c0_i32_1 = arith.constant 0 : i32
    return %c0_i32, %c0_i32_0 : i32, i32
  }
  func.func @transform_11(%arg0: i32) -> (i32, i32) {
    %c0_i32 = arith.constant 0 : i32
    %c0_i32_0 = arith.constant 0 : i32
    %c0_i32_1 = arith.constant 0 : i32
    return %c0_i32, %c0_i32_0 : i32, i32
  }
  func.func @transform_12(%arg0: i32) -> (i32, i32) {
    %c0_i32 = arith.constant 0 : i32
    %c0_i32_0 = arith.constant 0 : i32
    %c0_i32_1 = arith.constant 0 : i32
    return %c0_i32, %c0_i32_0 : i32, i32
  }
  func.func @transform_13(%arg0: i32) -> (i32, i32) {
    %c0_i32 = arith.constant 0 : i32
    %c0_i32_0 = arith.constant 0 : i32
    %c0_i32_1 = arith.constant 0 : i32
    return %c0_i32, %c0_i32_0 : i32, i32
  }
  func.func @transform_14(%arg0: i32) -> (i32, i32) {
    %c0_i32 = arith.constant 0 : i32
    %c0_i32_0 = arith.constant 0 : i32
    %c0_i32_1 = arith.constant 0 : i32
    return %c0_i32, %c0_i32_0 : i32, i32
  }
  func.func @transform_15(%arg0: i32) -> (i32, i32, i32) {
    %c0_i32 = arith.constant 0 : i32
    %c0_i32_0 = arith.constant 0 : i32
    %c0_i32_1 = arith.constant 0 : i32
    return %arg0, %c0_i32, %c0_i32_0 : i32, i32, i32
  }
}

</mosaic_0001>

<bundles_post_ra>
// kernel: tpu_custom_call.1
= control target key start
LH: loop header
LB: loop body
LE: loop exit
PB: predicated region body
PF: predicated region fallthrough
CT: control target
= control target key end

     0   :  { %s4250_s0 = inlined_call_operand.vmem [shape: f32[2,8,256], index: 0, kind: input, shape index: {}]   ;;  %s4251_s1 = inlined_call_operand.vmem [shape: bf16[8,72], index: 1, kind: input, shape index: {}]   ;;  %s4252_s2 = inlined_call_operand.vmem [shape: f32[8,1], index: 2, kind: input, shape index: {}]   ;;  %s4253_s3 = inlined_call_operand.vmem [shape: bf16[8,72], index: 3, kind: input, shape index: {}]   ;;  %s4254_s4 = inlined_call_operand.vmem [shape: f32[8,1], index: 4, kind: input, shape index: {}]   ;;  %s4255_s5 = inlined_call_operand.vmem [shape: bf16[8,72], index: 5, kind: input, shape index: {}]   ;;  %s4256_s6 = inlined_call_operand.vmem [shape: f32[8,1], index: 6, kind: input, shape index: {}]   ;;  %s4257_s7 = inlined_call_operand.vmem [shape: bf16[24,8], index: 7, kind: input, shape index: {}]   ;;  %s4258_s8 = inlined_call_operand.vmem [shape: f32[24,1], index: 8, kind: input, shape index: {}]   ;;  %s4259_s9 = inlined_call_operand.vmem [shape: bf16[8,8], index: 9, kind: input, shape index: {}]   ;;  %s4260_s10 = inlined_call_operand.vmem [shape: f32[8,1], index: 10, kind: input, shape index: {}]   ;;  %s4261_s11 = inlined_call_operand.vmem [shape: bf16[8,8], index: 11, kind: input, shape index: {}]   ;;  %s4262_s12 = inlined_call_operand.vmem [shape: f32[8,1], index: 12, kind: input, shape index: {}]   ;;  %s4263_s13 = inlined_call_operand.vmem [shape: bf16[8,72], index: 13, kind: input, shape index: {}]   ;;  %s4264_s14 = inlined_call_operand.vmem [shape: f32[8,1], index: 14, kind: input, shape index: {}]   ;;  %s4265_s15 = inlined_call_operand.hbm [shape: f32[2,8,256], index: 15, kind: output, shape index: {}]  }
   0x1   :  { %4335 = sst [smem:[#allocation43_spill]] %s4250_s0 }
   0x2   :  { %4336 = sst [smem:[#allocation44_spill]] %s4251_s1 }
   0x3   :  { %4337 = sst [smem:[#allocation45_spill]] %s4252_s2 }
   0x4   :  { %4338 = sst [smem:[#allocation46_spill]] %s4253_s3 }
   0x5   :  { %4339 = sst [smem:[#allocation47_spill]] %s4254_s4 }
   0x6   :  { %4340 = sst [smem:[#allocation48_spill]] %s4255_s5 }
   0x7   :  { %20 = vsyncpa [#allocation3], 0 }
   0x8   :  { %22 = vsyncpa [#allocation3 + $0x1], 0  ;;  %s3177_s18 = smov 0   ;;  %s3179_s19 = smov 0  }
   0x9   :  { %s3181_s20 = smov 0   ;;  %s3183_s21 = smov 0  }
   0xa LB: > { %4341 = sst [smem:[#allocation5_spill]] %s3074_s20  ;;  %s3198_s22 = sadd.s32 4294967295, %s3078_s21   ;;  %s3078_s21 = sphi %s3183_s21, %s4466_s21   ;;  %s3074_s20 = sphi %s3181_s20, %s4468_s20   ;;  %s3070_s19 = sphi %s3179_s19, %s4470_s19   ;;  %s3066_s18 = sphi %s3177_s18, %s4469_s18  }
   0xb   : > { %s2518_s23 = sadd.s32 4294967294, %s3078_s21   ;;  %s3202_s24 = sadd.s32 1, %s3078_s21  }
   0xc   : > { %4342 = sst [smem:[#allocation6_spill]] %s3202_s24  ;;  %s355_s25 = sadd.s32 1, %s3074_s20 }
   0xd   : > { %s352_s26 = ssub.s32 %s3078_s21, %s3202_s24  ;;  %p365_p0 = scmp.ne.s32.totalorder %s3074_s20, %s3070_s19 }
   0xe   : > { %p353_p1 = scmp.eq.s32.totalorder %s352_s26, 0  ;;  %p366_p2 = scmp.eq.s32.totalorder %s3198_s22, 1 }
   0xf   : > { %p371_p3 = scmp.ne.s32.totalorder %s3070_s19, %s3066_s18  ;;  %p372_p4 = scmp.eq.s32.totalorder %s2518_s23, 1 }
  0x10   : > { %s3213_s27 = scalar_select %p353_p1, %s3074_s20, %s355_s25  }
  0x11   : > { %p3215_p5 = por %p366_p2, %p365_p0  ;;  %p3219_p6 = por %p372_p4, %p371_p3 }
  0x12   : > { %4343 = sst [smem:[#allocation7_spill]] %s3213_s27  ;;  %p2521_p7 = scmp.ge.s32.totalorder %s3078_s21, 1 }
  0x13   : > { %p440_p8 = scmp.lt.s32.totalorder %s3078_s21, 3 }
  0x15   : > { %p441_p9 = pnand %p2521_p7, %p440_p8 }
  0x17   : > { %444 = sbr.rel (%p441_p9) target bundleno = 3529 (0xdc9), region = 80 }
  0x1e   : > { %p488_p10 = scmp.lt.s32.totalorder %s3198_s22, 1  ;;  %v496_v0 = vlaneseq  ;;  %s4346_s0 = sld [smem:[#allocation43_spill]]  ;;  %v3081_v6 = vmov 0.0   ;;  %vm541_vm4 = vcmask 138240   ;;  %vm570_vm5 = vcmask 130048  }
  0x1f   : > { %s4274_s26 = smov 17   ;;  %s3084_s17 = smov 16   ;;  %vm556_vm6 = vcmask 15360   ;;  %vm582_vm7 = vcmask 146432   ;;  %vm594_vm8 = vcmask 261120   ;;  %vm606_vm9 = vcmask 277504  }
  0x20   : > { %s489_s30 = scalar_select %p488_p10, %s3198_s22, 1  ;;  %v497_v1 = vand.u32 127, %v496_v0  ;;  %v4285_v58 = vmov 0   ;;  %vm622_vm10 = vcmask 1039360   ;;  %vm650_vm11 = vcmask 916480  }
  0x21   : > { %s3085_s23 = smov 34   ;;  %s4276_s27 = smov 127   ;;  %779 = vmatprep.mubr.bf16.mxu0 %v4285_v58  ;;  %2690 = vset.pattern.permute.xlu1 %v4285_v58  ;;  %vm636_vm12 = vcmask 1031168   ;;  %vm661_vm13 = vcmask 908288   ;;  %vm675_vm14 = vcmask 900096   ;;  %vm700_vm15 = vcmask 777216  }
  0x22   : > { %s2568_s16 = sshll.u32 %s489_s30, 4  ;;  %v498_v2 = vadd.s32 128, %v497_v1  ;;  %v503_v3 = vand.u32 15, %v497_v1  ;;  %s3082_s30 = smov 2   ;;  %974 = vmatprep.mubr.bf16.mxu1 %v4285_v58  ;;  %2731 = vset.pattern.permute.xlu0 %v4285_v58 }
  0x23   : > { %s4364_s2 = sld [smem:[#allocation45_spill]]  ;;  %s4365_s1 = sld [smem:[#allocation44_spill]] }
  0x24   : > { %s3230_s25 = scalar_lea.vmem %s4346_s0, %s2568_s16  ;;  %v510_v5 = vand.u32 15, %v498_v2  ;;  %vm523_vm0 = vcmp.ge.s32.totalorder %v503_v3, 1  ;;  %vm529_vm1 = vcmp.lt.s32.totalorder %v503_v3, 15  ;;  %s3083_s16 = smov 18  }
  0x25   : > { %v494_v4 = vld [vmem:[%s3230_s25] sm:$0xff]  ;;  %v2527_v7 = vsel %vm529_vm1, 1.0, %v3081_v6  ;;  %v495_v8 = vld [vmem:[%s3230_s25 + $0x8] sm:$0xff]  ;;  %v3235_v9 = vsel %vm523_vm0, 1.0, %v3081_v6  ;;  %s3086_s0 = smov 32   ;;  %vm689_vm0 = vcmask 785408  }
  0x26   : > { %537 = vrot.lane.b32.xlu0 %v494_v4, %s4274_s26  ;;  %vm530_vm2 = vcmp.lt.s32.totalorder %v510_v5, 15  ;;  %vm524_vm3 = vcmp.ge.s32.totalorder %v510_v5, 1  ;;  %4347 = vst [vmem:[#allocation8_spill] sm:$0xff] %v3235_v9  ;;  %vm714_vm1 = vcmask 769024   ;;  %s4372_s4 = sld [smem:[#allocation47_spill]]  ;;  %s4373_s3 = sld [smem:[#allocation46_spill]] }
  0x27   : > { %v2528_v10 = vsel %vm530_vm2, 1.0, %v3081_v6  ;;  %v3237_v11 = vsel %vm524_vm3, 1.0, %v3081_v6  ;;  %vm740_vm2 = vcmask 1043456   ;;  %vm736_vm3 = vcmask 588800   ;;  %s4378_s5 = sld [smem:[#allocation48_spill]] }
  0x28   : > { %4348 = vst [vmem:[#allocation9_spill] sm:$0xff] %v3237_v11  ;;  %v2625_v12 = vpack.i.bf16 %v2528_v10, %v2527_v7  ;;  %v2630_v13 = vpack.i.bf16 %v3237_v11, %v3235_v9 }
  0x29   : > { %v730_v61 = vld [vmem:[%s4364_s2] sm:$0xff]  ;;  %s4377_s2 = smov 94  }
  0x2a   : > { %539 = vrot.lane.b32.xlu0 %v495_v8, %s4274_s26  ;;  %2626 = vrot.lane.b32.xlu1 %v2625_v12, %s3082_s30  ;;  %s4278_s30 = smov 111  }
  0x2e   : > { %2636 = vrot.lane.b32.xlu0 %v2625_v12, %s3083_s16  ;;  %2631 = vrot.lane.b32.xlu1 %v2630_v13, %s3084_s17  ;;  %s4266_s16 = smov 112   ;;  %s4270_s17 = smov 110  }
  0x32   : > { %2646 = vrot.lane.b32.xlu0 %v2625_v12, %s3085_s23  ;;  %2641 = vrot.lane.b32.xlu1 %v2630_v13, %s3086_s0  ;;  %s4272_s0 = smov 95   ;;  %s4268_s23 = smov 126  }
  0x98   : > { %v538_v14 = vpop.permute.xlu0 %537 }
  0x99   : > { %v3243_v15 = vsel %vm541_vm4, 0.0, %v538_v14 }
  0x9a   : > { %616 = vrot.lane.b32.xlu0 %v3243_v15, %s4276_s27  ;;  %v548_v4 = vmul.f32 %v3235_v9, %v3243_v15 }
  0x9c   : > { %v540_v16 = vpop.permute.xlu0 %539  ;;  %v2627_v19 = vpop.permute.xlu1 %2626 }
  0x9d   : > { %v3248_v17 = vsel %vm541_vm4, %v538_v14, %v540_v16  ;;  %v3251_v18 = vsel %vm541_vm4, %v540_v16, 0.0  ;;  %v3261_v25 = vunpack.i.h.bf16 %v2627_v19  ;;  %v3263_v26 = vunpack.i.l.bf16 %v2627_v19 }
  0x9e   : > { %v2660_v20 = vpack.i.bf16 %v3251_v18, %v3248_v17  ;;  %v549_v3 = vmul.f32 %v3237_v11, %v3248_v17 }
  0x9f   : > { %4351 = vst [vmem:[#allocation12_spill] sm:$0xff] %v3261_v25  ;;  %4352 = vst [vmem:[#allocation13_spill] sm:$0xff] %v3263_v26  ;;  %v3279_v31 = vsel %vm556_vm6, %v3263_v26, %v3261_v25  ;;  %v561_v37 = vmul.f32 %v3263_v26, %v3243_v15  ;;  %v563_v39 = vmul.f32 %v3261_v25, %v3251_v18 }
  0xa0   : > { %2661 = vrot.lane.b32.xlu0 %v2660_v20, %s4272_s0  ;;  %2651 = vrot.lane.b32.xlu1 %v2660_v20, %s4276_s27  ;;  %v2637_v21 = vpop.permute.xlu0 %2636  ;;  %v2632_v22 = vpop.permute.xlu1 %2631  ;;  %4356 = vst [vmem:[#allocation17_spill] sm:$0xff] %v3279_v31  ;;  %v562_v38 = vmul.f32 %v3279_v31, %v3248_v17 }
  0xa1   : > { %v3257_v23 = vunpack.i.h.bf16 %v2632_v22  ;;  %v3259_v24 = vunpack.i.l.bf16 %v2632_v22  ;;  %v3265_v27 = vunpack.i.l.bf16 %v2637_v21  ;;  %v3270_v29 = vunpack.i.h.bf16 %v2637_v21 }
  0xa2   : > { %v2665_v46 = vpack.i.bf16 %v563_v39, %v562_v38 }
  0xa3   : > { %4349 = vst [vmem:[#allocation10_spill] sm:$0xff] %v3257_v23  ;;  %4350 = vst [vmem:[#allocation11_spill] sm:$0xff] %v3259_v24  ;;  %v575_v28 = vmul.f32 %v3259_v24, %v3243_v15  ;;  %v3274_v30 = vsel %vm570_vm5, %v3259_v24, %v3257_v23  ;;  %v587_v33 = vmul.f32 %v3265_v27, %v3243_v15  ;;  %vm1211_vm5 = vcmask 64512  }
  0xa4   : > { %4353 = vst [vmem:[#allocation14_spill] sm:$0xff] %v3265_v27  ;;  %2656 = vrot.lane.b32.xlu1 %v2660_v20, %s4278_s30  ;;  %4354 = vst [vmem:[#allocation15_spill] sm:$0xff] %v3270_v29  ;;  %v2642_v32 = vpop.permute.xlu1 %2641  ;;  %v576_v34 = vmul.f32 %v3274_v30, %v3248_v17  ;;  %v577_v35 = vmul.f32 %v3257_v23, %v3251_v18  ;;  %v3291_v36 = vsel %vm582_vm7, %v3265_v27, %v3270_v29  ;;  %v2647_v42 = vpop.permute.xlu0 %2646 }
  0xa5   : > { %4355 = vst [vmem:[#allocation16_spill] sm:$0xff] %v3274_v30  ;;  %644 = vrot.lane.b32.xlu0 %v575_v28, %s4266_s16  ;;  %4357 = vst [vmem:[#allocation18_spill] sm:$0xff] %v3291_v36  ;;  %v3300_v40 = vunpack.i.h.bf16 %v2642_v32  ;;  %v3302_v41 = vunpack.i.l.bf16 %v2642_v32  ;;  %v588_v44 = vmul.f32 %v3291_v36, %v3248_v17  ;;  %v589_v45 = vmul.f32 %v3270_v29, %v3251_v18 }
  0xa6   : > { %v2670_v43 = vpack.i.bf16 %v577_v35, %v576_v34  ;;  %v3310_v47 = vunpack.i.h.bf16 %v2647_v42  ;;  %v3312_v48 = vunpack.i.l.bf16 %v2647_v42 }
  0xa7   : > { %4358 = vst [vmem:[#allocation19_spill] sm:$0xff] %v3300_v40  ;;  %4359 = vst [vmem:[#allocation20_spill] sm:$0xff] %v3302_v41  ;;  %v3316_v49 = vsel %vm594_vm8, %v3302_v41, %v3300_v40  ;;  %v2675_v50 = vpack.i.bf16 %v589_v45, %v588_v44  ;;  %v599_v51 = vmul.f32 %v3302_v41, %v3243_v15 }
  0xa8   : > { %655 = vrot.lane.b32.xlu1 %v3243_v15, %s4278_s30  ;;  %4360 = vst [vmem:[#allocation21_spill] sm:$0xff] %v3310_v47  ;;  %4361 = vst [vmem:[#allocation22_spill] sm:$0xff] %v3312_v48  ;;  %v600_v52 = vmul.f32 %v3316_v49, %v3248_v17  ;;  %v601_v53 = vmul.f32 %v3300_v40, %v3251_v18  ;;  %v3328_v54 = vsel %vm606_vm9, %v3312_v48, %v3310_v47 }
  0xa9   : > { %669 = vrot.lane.b32.xlu0 %v587_v33, %s4270_s17  ;;  %4362 = vst [vmem:[#allocation23_spill] sm:$0xff] %v3316_v49  ;;  %4363 = vst [vmem:[#allocation24_spill] sm:$0xff] %v3328_v54  ;;  %v611_v56 = vmul.f32 %v3312_v48, %v3243_v15  ;;  %v612_v57 = vmul.f32 %v3328_v54, %v3248_v17  ;;  %v613_v59 = vmul.f32 %v3310_v47, %v3251_v18 }
  0xaa   : > { %v2680_v55 = vpack.i.bf16 %v601_v53, %v600_v52 }
  0xab   : > { %v2685_v60 = vpack.i.bf16 %v612_v57, %v611_v56 }
  0xac   : > { %630 = vrot.lane.b32.xlu1 %v561_v37, %s4268_s23 }
  0xad   : > { %2671 = vrot.lane.b32.xlu0 %v2670_v43, %s4266_s16  ;;  %s4333_s16 = smov 96  }
  0xb0   : > { %2666 = vrot.lane.b32.xlu1 %v2665_v46, %s4268_s23  ;;  %s4280_s23 = smov 94  }
  0xb1   : > { %2676 = vrot.lane.b32.xlu0 %v2675_v50, %s4270_s17  ;;  %s4369_s17 = smov 112  }
  0xb4   : > { %683 = vrot.lane.b32.xlu1 %v599_v51, %s4333_s16 }
  0xb5   : > { %694 = vrot.lane.b32.xlu0 %v3243_v15, %s4272_s0  ;;  %s4368_s0 = smov 95  }
  0xb8   : > { %2681 = vrot.lane.b32.xlu1 %v2680_v55, %s4333_s16 }
  0xb9   : > { %712 = vrot.lane.b32.xlu0 %v613_v59, %s4280_s23 }
  0xbc   : > { %2686 = vrot.lane.b32.xlu1 %v2685_v60, %s4280_s23 }
  0xc0   : > { %733 = vperm.xlu1 %2690, %v730_v61  }
 0x10c   : > { %v617_v62 = vpop.permute.xlu0 %616 }
 0x112   : > { %v2652_v63 = vpop.permute.xlu1 %2651  ;;  %v2662_v2 = vpop.permute.xlu0 %2661 }
 0x113   : > { %v2654_v0 = vunpack.i.h.bf16 %v2652_v63  ;;  %v2653_v1 = vunpack.i.l.bf16 %v2652_v63  ;;  %v2664_v52 = vunpack.i.h.bf16 %v2662_v2  ;;  %v2663_v53 = vunpack.i.l.bf16 %v2662_v2 }
 0x115   : > { %v624_v5 = vsel %vm622_vm10, %v2653_v1, %v2654_v0  ;;  %v623_v6 = vsel %vm622_vm10, %v617_v62, %v2653_v1  ;;  %v702_v0 = vsel %vm700_vm15, %v2663_v53, %v2664_v52 }
 0x116   : > { %v2657_v7 = vpop.permute.xlu1 %2656  ;;  %v720_v8 = vpack.c.bf16 %v624_v5, %v549_v3  ;;  %v719_v10 = vpack.c.bf16 %v623_v6, %v548_v4 }
 0x117   : > { %v645_v12 = vpop.permute.xlu0 %644  ;;  %v2659_v15 = vunpack.i.h.bf16 %v2657_v7  ;;  %v2658_v21 = vunpack.i.l.bf16 %v2657_v7 }
 0x118   : > { %747 = vmatprep.subr.bf16.mxu0 %v720_v8 }
 0x119   : > { %748 = vmatpush1.bf16.msra.mxu0 %v719_v10  ;;  %v663_v45 = vsel %vm661_vm13, %v2658_v21, %v2659_v15 }
 0x11a   : > { %v656_v13 = vpop.permute.xlu1 %655 }
 0x11b   : > { %v670_v14 = vpop.permute.xlu0 %669  ;;  %v662_v55 = vsel %vm661_vm13, %v656_v13, %v2658_v21 }
 0x11e   : > { %v631_v16 = vpop.permute.xlu1 %630 }
 0x11f   : > { %v2672_v18 = vpop.permute.xlu0 %2671 }
 0x120   : > { %v2674_v19 = vunpack.i.h.bf16 %v2672_v18  ;;  %v2673_v20 = vunpack.i.l.bf16 %v2672_v18 }
 0x122   : > { %v2667_v17 = vpop.permute.xlu1 %2666  ;;  %v652_v33 = vsel %vm650_vm11, %v2673_v20, %v2674_v19  ;;  %v651_v34 = vsel %vm650_vm11, %v645_v12, %v2673_v20 }
 0x123   : > { %v2669_v22 = vunpack.i.h.bf16 %v2667_v17  ;;  %v2668_v28 = vunpack.i.l.bf16 %v2667_v17  ;;  %v2677_v32 = vpop.permute.xlu0 %2676 }
 0x124   : > { %v2679_v35 = vunpack.i.h.bf16 %v2677_v32  ;;  %v2678_v37 = vunpack.i.l.bf16 %v2677_v32 }
 0x125   : > { %v638_v38 = vsel %vm636_vm12, %v2668_v28, %v2669_v22  ;;  %v637_v39 = vsel %vm636_vm12, %v631_v16, %v2668_v28  ;;  %v729_v16 = vld [vmem:[%s4365_s1] sm:$0xf]  ;;  %s4375_s1 = smov 111  }
 0x126   : > { %v684_v42 = vpop.permute.xlu1 %683  ;;  %v722_v43 = vpack.c.bf16 %v652_v33, %v638_v38  ;;  %v721_v44 = vpack.c.bf16 %v651_v34, %v637_v39  ;;  %v677_v46 = vsel %vm675_vm14, %v2678_v37, %v2679_v35  ;;  %v676_v51 = vsel %vm675_vm14, %v670_v14, %v2678_v37 }
 0x127   : > { %v724_v50 = vpack.c.bf16 %v677_v46, %v663_v45  ;;  %v695_v56 = vpop.permute.xlu0 %694  ;;  %v723_v61 = vpack.c.bf16 %v676_v51, %v662_v55 }
 0x128   : > { %749 = vmatprep.subr.bf16.mxu0 %v722_v43  ;;  %v701_v62 = vsel %vm700_vm15, %v695_v56, %v2663_v53 }
 0x129   : > { %750 = vmatpush1.bf16.msra.mxu0 %v721_v44 }
 0x12a   : > { %v2682_v57 = vpop.permute.xlu1 %2681  ;;  %751 = vmatprep.subr.bf16.mxu0 %v724_v50 }
 0x12b   : > { %v2684_v59 = vunpack.i.h.bf16 %v2682_v57  ;;  %v2683_v60 = vunpack.i.l.bf16 %v2682_v57  ;;  %v713_v7 = vpop.permute.xlu0 %712 }
 0x12d   : > { %752 = vmatpush1.bf16.msra.mxu0 %v723_v61  ;;  %v691_v63 = vsel %vm689_vm0, %v2683_v60, %v2684_v59  ;;  %v690_v1 = vsel %vm689_vm0, %v684_v42, %v2683_v60 }
 0x12e   : > { %v2687_v2 = vpop.permute.xlu1 %2686  ;;  %v726_v3 = vpack.c.bf16 %v702_v0, %v691_v63  ;;  %v725_v4 = vpack.c.bf16 %v701_v62, %v690_v1 }
 0x12f   : > { %v2689_v5 = vunpack.i.h.bf16 %v2687_v2  ;;  %v2688_v6 = vunpack.i.l.bf16 %v2687_v2 }
 0x130   : > { %753 = vmatprep.subr.bf16.mxu0 %v726_v3  ;;  %v927_v3 = vld [vmem:[%s4372_s4] sm:$0xff] }
 0x131   : > { %754 = vmatpush1.bf16.msra.mxu0 %v725_v4  ;;  %v716_v8 = vsel %vm714_vm1, %v2689_v5, %v713_v7  ;;  %v715_v10 = vsel %vm714_vm1, %v2688_v6, %v2689_v5 }
 0x132   : > { %v728_v12 = vpack.c.bf16 %v716_v8, %v716_v8  ;;  %v727_v13 = vpack.c.bf16 %v715_v10, %v715_v10 }
 0x134   : > { %2529 = vmatprep.subr.msk.bf16.mxu0 %vm740_vm2, %v728_v12  ;;  %v742_v14 = vsel %vm740_vm2, %v727_v13, 0 }
 0x135   : > { %756 = vmatpush1.bf16.msra.mxu0 %v742_v14 }
 0x138   : > { %2530 = vmatmul.mubr.msk.bf16.vlgmr.msra.gmra.mrb[0].mxu0 %vm736_vm3, %v729_v16 }
 0x139   : > { %1169 = vmatprep.mubr.bf16.mxu0 %v4285_v58 }
 0x13f   : > { %v734_v18 = vpop.permute.xlu1 %733 }
 0x20b   : > { %v781_v19 = vpop.f32.mrb[0].mxu0 }
 0x20c   : > { %v782_v20 = vadd.f32 %v781_v19, %v734_v18  ;;  %v783_v17 = vpop.f32.mrb[1].mxu0 }
 0x20d   : > { %v784_v15 = vadd.f32 %v783_v17, %v734_v18  ;;  %v785_v21 = vpop.f32.mrb[2].mxu0 }
 0x20e   : > { %v3376_v22 = vmax.f32 %v782_v20, 0.0  ;;  %v786_v28 = vpop.f32.mrb[3].mxu0 }
 0x20f   : > { %v3378_v32 = vmax.f32 %v784_v15, 0.0 }
 0x210   : > { %4366 = vst [vmem:[#allocation25_spill] sm:$0xff] %v3376_v22  ;;  %792 = vrot.lane.b32.xlu0 %v3376_v22, %s4274_s26 }
 0x211   : > { %4367 = vst [vmem:[#allocation26_spill] sm:$0xff] %v3378_v32  ;;  %794 = vrot.lane.b32.xlu1 %v3378_v32, %s4274_s26  ;;  %s4370_s26 = smov 110  }
 0x282   : > { %v793_v33 = vpop.permute.xlu0 %792 }
 0x283   : > { %v800_v34 = vsel %vm541_vm4, 0.0, %v793_v33  ;;  %v795_v35 = vpop.permute.xlu1 %794 }
 0x284   : > { %v796_v37 = vsel %vm541_vm4, %v793_v33, %v795_v35  ;;  %v801_v38 = vsel %vm541_vm4, %v795_v35, 0.0  ;;  %857 = vrot.lane.b32.xlu0 %v800_v34, %s4278_s30  ;;  %821 = vrot.lane.b32.xlu1 %v800_v34, %s4276_s27  ;;  %v807_v42 = vmul.f32 %v3259_v24, %v800_v34  ;;  %v810_v43 = vmul.f32 %v3265_v27, %v800_v34 }
 0x285   : > { %v2701_v39 = vpack.i.bf16 %v801_v38, %v796_v37  ;;  %v804_v44 = vmul.f32 %v3263_v26, %v800_v34  ;;  %v808_v45 = vmul.f32 %v796_v37, %v3274_v30  ;;  %v809_v46 = vmul.f32 %v3257_v23, %v801_v38 }
 0x286   : > { %v805_v50 = vmul.f32 %v796_v37, %v3279_v31  ;;  %v806_v51 = vmul.f32 %v3261_v25, %v801_v38  ;;  %v811_v55 = vmul.f32 %v796_v37, %v3291_v36  ;;  %v812_v56 = vmul.f32 %v3270_v29, %v801_v38 }
 0x287   : > { %v2711_v52 = vpack.i.bf16 %v809_v46, %v808_v45  ;;  %v813_v59 = vmul.f32 %v3302_v41, %v800_v34  ;;  %v814_v60 = vmul.f32 %v796_v37, %v3316_v49  ;;  %v815_v61 = vmul.f32 %v3300_v40, %v801_v38 }
 0x288   : > { %2702 = vrot.lane.b32.xlu1 %v2701_v39, %s4368_s0  ;;  %2692 = vrot.lane.b32.xlu0 %v2701_v39, %s4276_s27  ;;  %s4371_s27 = smov 126   ;;  %v2706_v53 = vpack.i.bf16 %v806_v51, %v805_v50  ;;  %v2716_v57 = vpack.i.bf16 %v812_v56, %v811_v55  ;;  %v816_v63 = vmul.f32 %v3312_v48, %v800_v34 }
 0x289   : > { %v2721_v62 = vpack.i.bf16 %v815_v61, %v814_v60  ;;  %v817_v0 = vmul.f32 %v796_v37, %v3328_v54  ;;  %v818_v1 = vmul.f32 %v3310_v47, %v801_v38  ;;  %v803_v12 = vmul.f32 %v3237_v11, %v796_v37 }
 0x28a   : > { %v802_v13 = vmul.f32 %v3235_v9, %v800_v34 }
 0x28b   : > { %v2726_v2 = vpack.i.bf16 %v817_v0, %v816_v63 }
 0x28c   : > { %847 = vrot.lane.b32.xlu1 %v807_v42, %s4369_s17  ;;  %2697 = vrot.lane.b32.xlu0 %v2701_v39, %s4278_s30  ;;  %s4376_s30 = smov 127  }
 0x290   : > { %870 = vrot.lane.b32.xlu1 %v810_v43, %s4370_s26  ;;  %834 = vrot.lane.b32.xlu0 %v804_v44, %s4371_s27 }
 0x294   : > { %2712 = vrot.lane.b32.xlu1 %v2711_v52, %s4369_s17  ;;  %2707 = vrot.lane.b32.xlu0 %v2706_v53, %s4371_s27 }
 0x298   : > { %2717 = vrot.lane.b32.xlu1 %v2716_v57, %s4370_s26  ;;  %883 = vrot.lane.b32.xlu0 %v813_v59, %s4333_s16 }
 0x29c   : > { %893 = vrot.lane.b32.xlu1 %v800_v34, %s4368_s0  ;;  %2722 = vrot.lane.b32.xlu0 %v2721_v62, %s4333_s16 }
 0x2a0   : > { %910 = vrot.lane.b32.xlu1 %v818_v1, %s4280_s23  ;;  %2727 = vrot.lane.b32.xlu0 %v2726_v2, %s4280_s23  ;;  %s4374_s23 = smov 17  }
 0x2a4   : > { %930 = vperm.xlu0 %2731, %v927_v3  }
 0x2f6   : > { %v858_v4 = vpop.permute.xlu0 %857  ;;  %v822_v5 = vpop.permute.xlu1 %821 }
 0x2fa   : > { %v2703_v6 = vpop.permute.xlu1 %2702  ;;  %v2693_v7 = vpop.permute.xlu0 %2692 }
 0x2fb   : > { %v2695_v8 = vunpack.i.h.bf16 %v2693_v7  ;;  %v2694_v10 = vunpack.i.l.bf16 %v2693_v7  ;;  %v2705_v57 = vunpack.i.h.bf16 %v2703_v6  ;;  %v2704_v59 = vunpack.i.l.bf16 %v2703_v6 }
 0x2fd   : > { %v828_v14 = vsel %vm622_vm10, %v2694_v10, %v2695_v8  ;;  %v827_v16 = vsel %vm622_vm10, %v822_v5, %v2694_v10  ;;  %v900_v10 = vsel %vm700_vm15, %v2704_v59, %v2705_v57 }
 0x2fe   : > { %v848_v18 = vpop.permute.xlu1 %847  ;;  %v2698_v19 = vpop.permute.xlu0 %2697  ;;  %v917_v20 = vpack.c.bf16 %v828_v14, %v803_v12  ;;  %v916_v17 = vpack.c.bf16 %v827_v16, %v802_v13 }
 0x2ff   : > { %v2700_v42 = vunpack.i.h.bf16 %v2698_v19  ;;  %v2699_v34 = vunpack.i.l.bf16 %v2698_v19 }
 0x300   : > { %942 = vmatprep.subr.bf16.mxu1 %v917_v20 }
 0x301   : > { %943 = vmatpush1.bf16.msra.mxu1 %v916_v17  ;;  %v864_v60 = vsel %vm661_vm13, %v2699_v34, %v2700_v42  ;;  %v863_v62 = vsel %vm661_vm13, %v858_v4, %v2699_v34 }
 0x302   : > { %v871_v15 = vpop.permute.xlu1 %870  ;;  %v835_v21 = vpop.permute.xlu0 %834 }
 0x306   : > { %v2713_v28 = vpop.permute.xlu1 %2712  ;;  %v2708_v33 = vpop.permute.xlu0 %2707 }
 0x307   : > { %v2715_v35 = vunpack.i.h.bf16 %v2713_v28  ;;  %v2714_v38 = vunpack.i.l.bf16 %v2713_v28  ;;  %v2710_v39 = vunpack.i.h.bf16 %v2708_v33  ;;  %v2709_v37 = vunpack.i.l.bf16 %v2708_v33  ;;  %v926_v33 = vld [vmem:[%s4373_s3] sm:$0xf] }
 0x309   : > { %v841_v43 = vsel %vm636_vm12, %v2709_v37, %v2710_v39  ;;  %v854_v44 = vsel %vm650_vm11, %v2714_v38, %v2715_v35  ;;  %v840_v45 = vsel %vm636_vm12, %v835_v21, %v2709_v37  ;;  %v853_v46 = vsel %vm650_vm11, %v848_v18, %v2714_v38 }
 0x30a   : > { %v2718_v50 = vpop.permute.xlu1 %2717  ;;  %v884_v51 = vpop.permute.xlu0 %883  ;;  %v919_v52 = vpack.c.bf16 %v854_v44, %v841_v43  ;;  %v918_v53 = vpack.c.bf16 %v853_v46, %v840_v45 }
 0x30b   : > { %v2720_v55 = vunpack.i.h.bf16 %v2718_v50  ;;  %v2719_v56 = vunpack.i.l.bf16 %v2718_v50 }
 0x30c   : > { %944 = vmatprep.subr.bf16.mxu1 %v919_v52 }
 0x30d   : > { %945 = vmatpush1.bf16.msra.mxu1 %v918_v53  ;;  %v877_v61 = vsel %vm675_vm14, %v2719_v56, %v2720_v55  ;;  %v876_v63 = vsel %vm675_vm14, %v871_v15, %v2719_v56 }
 0x30e   : > { %v894_v0 = vpop.permute.xlu1 %893  ;;  %v2723_v1 = vpop.permute.xlu0 %2722  ;;  %v921_v2 = vpack.c.bf16 %v877_v61, %v864_v60  ;;  %v920_v3 = vpack.c.bf16 %v876_v63, %v863_v62 }
 0x30f   : > { %v2725_v5 = vunpack.i.h.bf16 %v2723_v1  ;;  %v2724_v7 = vunpack.i.l.bf16 %v2723_v1  ;;  %v899_v8 = vsel %vm700_vm15, %v894_v0, %v2704_v59 }
 0x310   : > { %946 = vmatprep.subr.bf16.mxu1 %v921_v2 }
 0x311   : > { %947 = vmatpush1.bf16.msra.mxu1 %v920_v3  ;;  %v890_v6 = vsel %vm689_vm0, %v2724_v7, %v2725_v5  ;;  %v889_v12 = vsel %vm689_vm0, %v884_v51, %v2724_v7 }
 0x312   : > { %v2728_v13 = vpop.permute.xlu0 %2727  ;;  %v923_v4 = vpack.c.bf16 %v900_v10, %v890_v6  ;;  %v922_v14 = vpack.c.bf16 %v899_v8, %v889_v12  ;;  %v911_v19 = vpop.permute.xlu1 %910 }
 0x313   : > { %v2730_v16 = vunpack.i.h.bf16 %v2728_v13  ;;  %v2729_v18 = vunpack.i.l.bf16 %v2728_v13 }
 0x314   : > { %948 = vmatprep.subr.bf16.mxu1 %v923_v4 }
 0x315   : > { %949 = vmatpush1.bf16.msra.mxu1 %v922_v14  ;;  %v913_v20 = vsel %vm714_vm1, %v2730_v16, %v911_v19  ;;  %v912_v17 = vsel %vm714_vm1, %v2729_v18, %v2730_v16  ;;  %v1186_v16 = vld [vmem:[%s4258_s8 + $0x8] sm:$0xff]  ;;  %v1185_v18 = vld [vmem:[%s4258_s8] sm:$0xff] }
 0x316   : > { %v925_v15 = vpack.c.bf16 %v913_v20, %v913_v20  ;;  %v924_v21 = vpack.c.bf16 %v912_v17, %v912_v17 }
 0x318   : > { %2531 = vmatprep.subr.msk.bf16.mxu1 %vm740_vm2, %v925_v15  ;;  %v937_v28 = vsel %vm740_vm2, %v924_v21, 0 }
 0x319   : > { %951 = vmatpush1.bf16.msra.mxu1 %v937_v28 }
 0x31c   : > { %2532 = vmatmul.mubr.msk.bf16.vlgmr.msra.gmra.mrb[0].mxu1 %vm736_vm3, %v926_v33 }
 0x31d   : > { %1399 = vmatprep.mubr.bf16.mxu1 %v4285_v58 }
 0x323   : > { %v931_v35 = vpop.permute.xlu0 %930 }
 0x3ef   : > { %v976_v38 = vpop.f32.mrb[0].mxu1 }
 0x3f0   : > { %v977_v39 = vadd.f32 %v976_v38, %v931_v35  ;;  %v978_v37 = vpop.f32.mrb[1].mxu1 }
 0x3f1   : > { %v980_v42 = vpop.f32.mrb[2].mxu1  ;;  %v979_v43 = vadd.f32 %v978_v37, %v931_v35 }
 0x3f2   : > { %v983_v34 = vmax.f32 %v977_v39, 0.0  ;;  %v981_v44 = vpop.f32.mrb[3].mxu1 }
 0x3f3   : > { %v984_v45 = vmax.f32 %v979_v43, 0.0 }
 0x3f4   : > { %987 = vrot.lane.b32.xlu1 %v983_v34, %s4374_s23 }
 0x3f8   : > { %989 = vrot.lane.b32.xlu1 %v984_v45, %s4374_s23 }
 0x466   : > { %v988_v46 = vpop.permute.xlu1 %987 }
 0x467   : > { %v995_v50 = vsel %vm541_vm4, 0.0, %v988_v46 }
 0x468   : > { %1052 = vrot.lane.b32.xlu0 %v995_v50, %s4375_s1  ;;  %1016 = vrot.lane.b32.xlu1 %v995_v50, %s4376_s30  ;;  %v1002_v56 = vmul.f32 %v3259_v24, %v995_v50  ;;  %v1005_v57 = vmul.f32 %v3265_v27, %v995_v50  ;;  %v999_v59 = vmul.f32 %v3263_v26, %v995_v50 }
 0x469   : > { %v1008_v7 = vmul.f32 %v3302_v41, %v995_v50  ;;  %v1011_v13 = vmul.f32 %v3312_v48, %v995_v50  ;;  %v997_v35 = vmul.f32 %v3235_v9, %v995_v50 }
 0x46a   : > { %v990_v51 = vpop.permute.xlu1 %989 }
 0x46b   : > { %v991_v52 = vsel %vm541_vm4, %v988_v46, %v990_v51  ;;  %v996_v53 = vsel %vm541_vm4, %v990_v51, 0.0 }
 0x46c   : > { %v2742_v55 = vpack.i.bf16 %v996_v53, %v991_v52  ;;  %v1003_v60 = vmul.f32 %v991_v52, %v3274_v30  ;;  %v1004_v61 = vmul.f32 %v3257_v23, %v996_v53  ;;  %v1000_v62 = vmul.f32 %v991_v52, %v3279_v31 }
 0x46d   : > { %v1001_v63 = vmul.f32 %v3261_v25, %v996_v53  ;;  %v1006_v2 = vmul.f32 %v991_v52, %v3291_v36  ;;  %v1007_v3 = vmul.f32 %v3270_v29, %v996_v53  ;;  %v1009_v8 = vmul.f32 %v991_v52, %v3316_v49 }
 0x46e   : > { %2743 = vrot.lane.b32.xlu1 %v2742_v55, %s4368_s0  ;;  %2733 = vrot.lane.b32.xlu0 %v2742_v55, %s4376_s30  ;;  %v2752_v0 = vpack.i.bf16 %v1004_v61, %v1003_v60  ;;  %v1010_v6 = vmul.f32 %v3300_v40, %v996_v53  ;;  %v1012_v12 = vmul.f32 %v991_v52, %v3328_v54 }
 0x46f   : > { %v2747_v1 = vpack.i.bf16 %v1001_v63, %v1000_v62  ;;  %v2757_v5 = vpack.i.bf16 %v1007_v3, %v1006_v2  ;;  %v1013_v4 = vmul.f32 %v3310_v47, %v996_v53  ;;  %v998_v33 = vmul.f32 %v3237_v11, %v991_v52 }
 0x470   : > { %v2762_v10 = vpack.i.bf16 %v1010_v6, %v1009_v8  ;;  %v2767_v14 = vpack.i.bf16 %v1012_v12, %v1011_v13 }
 0x472   : > { %1042 = vrot.lane.b32.xlu1 %v1002_v56, %s4369_s17  ;;  %2738 = vrot.lane.b32.xlu0 %v2742_v55, %s4375_s1 }
 0x476   : > { %1065 = vrot.lane.b32.xlu1 %v1005_v57, %s4370_s26  ;;  %1029 = vrot.lane.b32.xlu0 %v999_v59, %s4371_s27 }
 0x47a   : > { %2753 = vrot.lane.b32.xlu1 %v2752_v0, %s4369_s17  ;;  %2748 = vrot.lane.b32.xlu0 %v2747_v1, %s4371_s27 }
 0x47e   : > { %2758 = vrot.lane.b32.xlu1 %v2757_v5, %s4370_s26  ;;  %1078 = vrot.lane.b32.xlu0 %v1008_v7, %s4333_s16 }
 0x482   : > { %1088 = vrot.lane.b32.xlu1 %v995_v50, %s4368_s0  ;;  %2763 = vrot.lane.b32.xlu0 %v2762_v10, %s4333_s16 }
 0x486   : > { %1105 = vrot.lane.b32.xlu1 %v1013_v4, %s4377_s2  ;;  %2768 = vrot.lane.b32.xlu0 %v2767_v14, %s4377_s2 }
 0x48a   : > { %1195 = vperm.xlu1 %2690, %v1186_v16   ;;  %1190 = vperm.xlu0 %2731, %v1185_v18  }
 0x4da   : > { %v1053_v19 = vpop.permute.xlu0 %1052  ;;  %v1017_v20 = vpop.permute.xlu1 %1016 }
 0x4e0   : > { %v2734_v17 = vpop.permute.xlu0 %2733  ;;  %v2744_v15 = vpop.permute.xlu1 %2743 }
 0x4e1   : > { %v2736_v21 = vunpack.i.h.bf16 %v2734_v17  ;;  %v2735_v28 = vunpack.i.l.bf16 %v2734_v17  ;;  %v2746_v7 = vunpack.i.h.bf16 %v2744_v15  ;;  %v2745_v8 = vunpack.i.l.bf16 %v2744_v15 }
 0x4e3   : > { %v1022_v38 = vsel %vm622_vm10, %v1017_v20, %v2735_v28  ;;  %v1023_v39 = vsel %vm622_vm10, %v2735_v28, %v2736_v21  ;;  %v1095_v28 = vsel %vm700_vm15, %v2745_v8, %v2746_v7 }
 0x4e4   : > { %v2739_v37 = vpop.permute.xlu0 %2738  ;;  %v1043_v42 = vpop.permute.xlu1 %1042  ;;  %v1112_v34 = vpack.c.bf16 %v1023_v39, %v998_v33  ;;  %v1111_v43 = vpack.c.bf16 %v1022_v38, %v997_v35 }
 0x4e5   : > { %v2741_v57 = vunpack.i.h.bf16 %v2739_v37  ;;  %v2740_v50 = vunpack.i.l.bf16 %v2739_v37 }
 0x4e6   : > { %1137 = vmatprep.subr.bf16.mxu0 %v1112_v34 }
 0x4e7   : > { %1138 = vmatpush1.bf16.msra.mxu0 %v1111_v43  ;;  %v1058_v6 = vsel %vm661_vm13, %v1053_v19, %v2740_v50  ;;  %v1059_v12 = vsel %vm661_vm13, %v2740_v50, %v2741_v57 }
 0x4e8   : > { %v1030_v44 = vpop.permute.xlu0 %1029  ;;  %v1066_v45 = vpop.permute.xlu1 %1065 }
 0x4ec   : > { %v2749_v46 = vpop.permute.xlu0 %2748  ;;  %v2754_v51 = vpop.permute.xlu1 %2753 }
 0x4ed   : > { %v2751_v53 = vunpack.i.h.bf16 %v2749_v46  ;;  %v2750_v55 = vunpack.i.l.bf16 %v2749_v46  ;;  %v2756_v56 = vunpack.i.h.bf16 %v2754_v51  ;;  %v2755_v52 = vunpack.i.l.bf16 %v2754_v51 }
 0x4ee   : > { %v1181_v46 = vpack.c.bf16 %v3378_v32, %v3378_v32 }
 0x4ef   : > { %v1035_v59 = vsel %vm636_vm12, %v1030_v44, %v2750_v55  ;;  %v1048_v60 = vsel %vm650_vm11, %v1043_v42, %v2755_v52  ;;  %v1036_v61 = vsel %vm636_vm12, %v2750_v55, %v2751_v53  ;;  %v1049_v62 = vsel %vm650_vm11, %v2755_v52, %v2756_v56  ;;  %v1121_v55 = vld [vmem:[%s4378_s5] sm:$0xf] }
 0x4f0   : > { %v1079_v63 = vpop.permute.xlu0 %1078  ;;  %v2759_v0 = vpop.permute.xlu1 %2758  ;;  %v1114_v1 = vpack.c.bf16 %v1049_v62, %v1036_v61  ;;  %v1113_v2 = vpack.c.bf16 %v1048_v60, %v1035_v59  ;;  %v1180_v53 = vpack.c.bf16 %v3376_v22, %v3376_v22  ;;  %v2812_v52 = vld [vmem:[%s4257_s7] sm:$0xff]  }
 0x4f1   : > { %v2761_v3 = vunpack.i.h.bf16 %v2759_v0  ;;  %v2760_v5 = vunpack.i.l.bf16 %v2759_v0 }
 0x4f2   : > { %1139 = vmatprep.subr.bf16.mxu0 %v1114_v1  ;;  %v1219_v56 = vsel %vm740_vm2, %v1180_v53, 0 }
 0x4f3   : > { %v1071_v10 = vsel %vm675_vm14, %v1066_v45, %v2760_v5  ;;  %1140 = vmatpush1.bf16.msra.mxu0 %v1113_v2  ;;  %v1072_v13 = vsel %vm675_vm14, %v2760_v5, %v2761_v3 }
 0x4f4   : > { %v2764_v4 = vpop.permute.xlu0 %2763  ;;  %v1089_v14 = vpop.permute.xlu1 %1088  ;;  %v1116_v16 = vpack.c.bf16 %v1072_v13, %v1059_v12  ;;  %v1115_v18 = vpack.c.bf16 %v1071_v10, %v1058_v6 }
 0x4f5   : > { %v2766_v20 = vunpack.i.h.bf16 %v2764_v4  ;;  %v2765_v17 = vunpack.i.l.bf16 %v2764_v4  ;;  %v1094_v15 = vsel %vm700_vm15, %v1089_v14, %v2745_v8 }
 0x4f6   : > { %1141 = vmatprep.subr.bf16.mxu0 %v1116_v16 }
 0x4f7   : > { %v1084_v21 = vsel %vm689_vm0, %v1079_v63, %v2765_v17  ;;  %1142 = vmatpush1.bf16.msra.mxu0 %v1115_v18  ;;  %v1085_v19 = vsel %vm689_vm0, %v2765_v17, %v2766_v20 }
 0x4f8   : > { %v1117_v33 = vpack.c.bf16 %v1094_v15, %v1084_v21  ;;  %v2769_v35 = vpop.permute.xlu0 %2768  ;;  %v1118_v38 = vpack.c.bf16 %v1095_v28, %v1085_v19  ;;  %v1106_v42 = vpop.permute.xlu1 %1105 }
 0x4f9   : > { %v2771_v39 = vunpack.i.h.bf16 %v2769_v35  ;;  %v2770_v37 = vunpack.i.l.bf16 %v2769_v35 }
 0x4fa   : > { %1143 = vmatprep.subr.bf16.mxu0 %v1118_v38 }
 0x4fb   : > { %v1108_v34 = vsel %vm714_vm1, %v2771_v39, %v1106_v42  ;;  %1144 = vmatpush1.bf16.msra.mxu0 %v1117_v33  ;;  %v1107_v43 = vsel %vm714_vm1, %v2770_v37, %v2771_v39 }
 0x4fc   : > { %v1120_v44 = vpack.c.bf16 %v1108_v34, %v1108_v34  ;;  %v1119_v45 = vpack.c.bf16 %v1107_v43, %v1107_v43 }
 0x4fe   : > { %2533 = vmatprep.subr.msk.bf16.mxu0 %vm740_vm2, %v1120_v44  ;;  %v1132_v51 = vsel %vm740_vm2, %v1119_v45, 0 }
 0x4ff   : > { %1146 = vmatpush1.bf16.msra.mxu0 %v1132_v51 }
 0x500   : > { %2537 = vmatprep.subr.msk.bf16.mxu0 %vm740_vm2, %v1181_v46 }
 0x502   : > { %2534 = vmatmul.mubr.msk.bf16.vlgmr.msra.gmra.mrb[4].mxu0 %vm736_vm3, %v1121_v55 }
 0x503   : > { %1225 = vmatpush1.bf16.msra.mxu0 %v1219_v56  ;;  %1256 = vmatprep.mubr.bf16.mxu0 %v4285_v58 }
 0x509   : > { %v1191_v61 = vpop.permute.xlu0 %1190  ;;  %v1196_v1 = vpop.permute.xlu1 %1195 }
 0x50a   : > { %2538 = vmatmul.mubr.msk.bf16.vlgmr.msra.gmra.mrb[8].mxu0 %vm1211_vm5, %v2812_v52 }
 0x50b   : > { %1266 = vmatprep.mubr.bf16.mxu0 %v4285_v58 }
 0x5d5   : > { %v3524_v57 = vpop.f32.mrb[4].mxu0 }
 0x5d6   : > { %4379 = vst [vmem:[#allocation27_spill] sm:$0xff] %v3524_v57  ;;  %v3526_v50 = vpop.f32.mrb[5].mxu0 }
 0x5d7   : > { %4380 = vst [vmem:[#allocation28_spill] sm:$0xff] %v3526_v50  ;;  %v1175_v59 = vpop.f32.mrb[6].mxu0 }
 0x5d8   : > { %v1176_v60 = vpop.f32.mrb[7].mxu0 }
 0x5dd   : > { %v1258_v62 = vpop.f32.mrb[8].mxu0 }
 0x5de   : > { %v1259_v63 = vadd.f32 %v1258_v62, %v1191_v61  ;;  %v1260_v0 = vpop.f32.mrb[9].mxu0 }
 0x5df   : > { %v1261_v2 = vadd.f32 %v1260_v0, %v1191_v61  ;;  %v1262_v3 = vpop.f32.mrb[10].mxu0 }
 0x5e0   : > { %v1275_v5 = vpack.c.bf16 %v1259_v63, %v1259_v63  ;;  %v1263_v7 = vadd.f32 %v1262_v3, %v1196_v1  ;;  %v1264_v8 = vpop.f32.mrb[11].mxu0 }
 0x5e1   : > { %v1276_v6 = vpack.c.bf16 %v1261_v2, %v1261_v2  ;;  %v1265_v10 = vadd.f32 %v1264_v8, %v1196_v1 }
 0x5e2   : > { %v1309_v12 = vpack.c.bf16 %v1263_v7, %v1263_v7  ;;  %1277 = vxpose.xlu0.c.b16.start.end [1/1] (short) %v1275_v5, 128 }
 0x5e3   : > { %v1310_v13 = vpack.c.bf16 %v1265_v10, %v1265_v10  ;;  %1293 = vxpose.xlu1.c.b16.start.end [1/1] (short) %v1276_v6, 128 }
 0x5e4   : > { %v1362_v4 = vsel %vm740_vm2, %v1309_v12, 0 }
 0x5e5   : > { %2540 = vmatprep.subr.msk.bf16.mxu1 %vm740_vm2, %v1310_v13 }
 0x5e6   : > { %1368 = vmatpush1.bf16.msra.mxu1 %v1362_v4 }
 0x648   : > { %v1285_v14 = vpop.trf.xlu0 }
 0x649   : > { %2541 = vmatmul.mubr.msk.bf16.vlgmr.msra.gmra.mrb[4].mxu1 %vm1211_vm5, %v1285_v14  ;;  %v1301_v28 = vpop.trf.xlu1 }
 0x64a   : > { %1409 = vmatprep.mubr.bf16.mxu1 %v4285_v58 }
 0x64c   : > { %v1286_v16 = vpop.trf.xlu0 }
 0x64d   : > { %v1302_v33 = vpop.trf.xlu1 }
 0x650   : > { %v1287_v18 = vpop.trf.xlu0 }
 0x651   : > { %2542 = vmatmul.mubr.msk.bf16.gmra.mrb[8].mxu1 %vm1211_vm5, %v1286_v16  ;;  %v1303_v35 = vpop.trf.xlu1 }
 0x652   : > { %1419 = vmatprep.mubr.bf16.mxu1 %v4285_v58 }
 0x654   : > { %v1288_v20 = vpop.trf.xlu0 }
 0x655   : > { %v1304_v38 = vpop.trf.xlu1 }
 0x658   : > { %v1289_v17 = vpop.trf.xlu0 }
 0x659   : > { %2543 = vmatmul.mubr.msk.bf16.gmra.mrb[12].mxu1 %vm1211_vm5, %v1287_v18  ;;  %v1305_v39 = vpop.trf.xlu1 }
 0x65a   : > { %1429 = vmatprep.mubr.bf16.mxu1 %v4285_v58 }
 0x65c   : > { %v1290_v21 = vpop.trf.xlu0 }
 0x65d   : > { %v1306_v37 = vpop.trf.xlu1 }
 0x660   : > { %v1291_v15 = vpop.trf.xlu0 }
 0x661   : > { %2544 = vmatmul.mubr.msk.bf16.gmra.mrb[16].mxu1 %vm1211_vm5, %v1288_v20  ;;  %v1307_v42 = vpop.trf.xlu1 }
 0x662   : > { %1439 = vmatprep.mubr.bf16.mxu1 %v4285_v58 }
 0x664   : > { %v1292_v19 = vpop.trf.xlu0 }
 0x665   : > { %v1308_v34 = vpop.trf.xlu1 }
 0x669   : > { %2545 = vmatmul.mubr.msk.bf16.gmra.mrb[20].mxu1 %vm1211_vm5, %v1289_v17 }
 0x66a   : > { %1449 = vmatprep.mubr.bf16.mxu1 %v4285_v58 }
 0x671   : > { %2546 = vmatmul.mubr.msk.bf16.gmra.mrb[24].mxu1 %vm1211_vm5, %v1290_v21 }
 0x672   : > { %1459 = vmatprep.mubr.bf16.mxu1 %v4285_v58 }
 0x679   : > { %2547 = vmatmul.mubr.msk.bf16.gmra.mrb[28].mxu1 %vm1211_vm5, %v1291_v15 }
 0x67a   : > { %1469 = vmatprep.mubr.bf16.mxu1 %v4285_v58 }
 0x681   : > { %2548 = vmatmul.mubr.msk.bf16.gmra.mrb[32].mxu1 %vm1211_vm5, %v1292_v19 }
 0x682   : > { %1479 = vmatprep.mubr.bf16.mxu1 %v4285_v58 }
 0x689   : > { %2549 = vmatmul.mubr.msk.bf16.gmra.mrb[36].mxu1 %vm1211_vm5, %v1301_v28 }
 0x68a   : > { %1489 = vmatprep.mubr.bf16.mxu1 %v4285_v58 }
 0x691   : > { %2550 = vmatmul.mubr.msk.bf16.gmra.mrb[40].mxu1 %vm1211_vm5, %v1302_v33 }
 0x692   : > { %1499 = vmatprep.mubr.bf16.mxu1 %v4285_v58 }
 0x699   : > { %2551 = vmatmul.mubr.msk.bf16.gmra.mrb[44].mxu1 %vm1211_vm5, %v1303_v35 }
 0x69a   : > { %1509 = vmatprep.mubr.bf16.mxu1 %v4285_v58 }
 0x6a1   : > { %2552 = vmatmul.mubr.msk.bf16.gmra.mrb[48].mxu1 %vm1211_vm5, %v1304_v38 }
 0x6a2   : > { %1519 = vmatprep.mubr.bf16.mxu1 %v4285_v58 }
 0x6a9   : > { %2553 = vmatmul.mubr.msk.bf16.gmra.mrb[52].mxu1 %vm1211_vm5, %v1305_v39 }
 0x6aa   : > { %1529 = vmatprep.mubr.bf16.mxu1 %v4285_v58 }
 0x6b1   : > { %2554 = vmatmul.mubr.msk.bf16.gmra.mrb[56].mxu1 %vm1211_vm5, %v1306_v37 }
 0x6b2   : > { %1539 = vmatprep.mubr.bf16.mxu1 %v4285_v58 }
 0x6b9   : > { %2555 = vmatmul.mubr.msk.bf16.gmra.mrb[60].mxu1 %vm1211_vm5, %v1307_v42 }
 0x6ba   : > { %1549 = vmatprep.mubr.bf16.mxu1 %v4285_v58 }
 0x6c1   : > { %2556 = vmatmul.mubr.msk.bf16.gmra.mrb[64].mxu1 %vm1211_vm5, %v1308_v34 }
 0x6c2   : > { %2163 = vmatprep.mubr.bf16.mxu1 %v4285_v58 }
 0x71c   : > { %v3562_v43 = vpop.f32.mrb[4].mxu1 }
 0x71d   : > { %v3564_v44 = vpop.f32.mrb[5].mxu1 }
 0x71e   : > { %v3566_v45 = vpop.f32.mrb[6].mxu1  ;;  %v1560_v46 = vmax.f32 %v3562_v43, %v3564_v44 }
 0x71f   : > { %v3570_v51 = vpop.f32.mrb[7].mxu1 }
 0x720   : > { %1561 = vmax.xlane.f32.xlu0 %v1560_v46  ;;  %v1563_v53 = vmax.f32 %v3566_v45, %v3570_v51 }
 0x722   : > { %1564 = vmax.xlane.f32.xlu1 %v1563_v53 }
 0x724   : > { %v3574_v55 = vpop.f32.mrb[8].mxu1 }
 0x725   : > { %v3576_v56 = vpop.f32.mrb[9].mxu1 }
 0x726   : > { %v3578_v52 = vpop.f32.mrb[10].mxu1  ;;  %v1566_v59 = vmax.f32 %v3574_v55, %v3576_v56 }
 0x727   : > { %v3582_v60 = vpop.f32.mrb[11].mxu1 }
 0x728   : > { %1567 = vmax.xlane.f32.xlu0 %v1566_v59  ;;  %v1569_v61 = vmax.f32 %v3578_v52, %v3582_v60 }
 0x72c   : > { %1570 = vmax.xlane.f32.xlu0 %v1569_v61  ;;  %v3586_v62 = vpop.f32.mrb[12].mxu1 }
 0x72d   : > { %v3588_v63 = vpop.f32.mrb[13].mxu1 }
 0x72e   : > { %v3590_v0 = vpop.f32.mrb[14].mxu1  ;;  %v1572_v1 = vmax.f32 %v3586_v62, %v3588_v63 }
 0x72f   : > { %v3594_v2 = vpop.f32.mrb[15].mxu1 }
 0x730   : > { %1573 = vmax.xlane.f32.xlu1 %v1572_v1  ;;  %v1575_v3 = vmax.f32 %v3590_v0, %v3594_v2 }
 0x732   : > { %1576 = vmax.xlane.f32.xlu0 %v1575_v3 }
 0x734   : > { %v3598_v5 = vpop.f32.mrb[16].mxu1 }
 0x735   : > { %v3600_v7 = vpop.f32.mrb[17].mxu1 }
 0x736   : > { %v3602_v8 = vpop.f32.mrb[18].mxu1  ;;  %v1578_v6 = vmax.f32 %v3598_v5, %v3600_v7 }
 0x737   : > { %v3606_v10 = vpop.f32.mrb[19].mxu1 }
 0x738   : > { %1579 = vmax.xlane.f32.xlu1 %v1578_v6  ;;  %v1581_v12 = vmax.f32 %v3602_v8, %v3606_v10 }
 0x73a   : > { %1582 = vmax.xlane.f32.xlu0 %v1581_v12 }
 0x73c   : > { %v3610_v13 = vpop.f32.mrb[20].mxu1 }
 0x73d   : > { %v3612_v4 = vpop.f32.mrb[21].mxu1 }
 0x73e   : > { %v3614_v14 = vpop.f32.mrb[22].mxu1  ;;  %v1584_v16 = vmax.f32 %v3610_v13, %v3612_v4 }
 0x73f   : > { %v3618_v18 = vpop.f32.mrb[23].mxu1 }
 0x740   : > { %1585 = vmax.xlane.f32.xlu1 %v1584_v16  ;;  %v1587_v20 = vmax.f32 %v3614_v14, %v3618_v18 }
 0x742   : > { %1588 = vmax.xlane.f32.xlu0 %v1587_v20 }
 0x744   : > { %v3622_v17 = vpop.f32.mrb[24].mxu1 }
 0x745   : > { %v3624_v21 = vpop.f32.mrb[25].mxu1 }
 0x746   : > { %v3626_v15 = vpop.f32.mrb[26].mxu1  ;;  %v1590_v19 = vmax.f32 %v3622_v17, %v3624_v21 }
 0x747   : > { %v3630_v28 = vpop.f32.mrb[27].mxu1 }
 0x748   : > { %1591 = vmax.xlane.f32.xlu1 %v1590_v19  ;;  %v1593_v33 = vmax.f32 %v3626_v15, %v3630_v28 }
 0x74a   : > { %1594 = vmax.xlane.f32.xlu0 %v1593_v33 }
 0x74c   : > { %v3634_v35 = vpop.f32.mrb[28].mxu1 }
 0x74d   : > { %v3636_v38 = vpop.f32.mrb[29].mxu1 }
 0x74e   : > { %v3638_v39 = vpop.f32.mrb[30].mxu1  ;;  %v1596_v37 = vmax.f32 %v3634_v35, %v3636_v38 }
 0x74f   : > { %v3642_v42 = vpop.f32.mrb[31].mxu1 }
 0x750   : > { %1597 = vmax.xlane.f32.xlu1 %v1596_v37  ;;  %v1599_v34 = vmax.f32 %v3638_v39, %v3642_v42 }
 0x752   : > { %1600 = vmax.xlane.f32.xlu0 %v1599_v34 }
 0x754   : > { %v3646_v46 = vpop.f32.mrb[32].mxu1 }
 0x755   : > { %v3648_v53 = vpop.f32.mrb[33].mxu1 }
 0x756   : > { %v3650_v59 = vpop.f32.mrb[34].mxu1  ;;  %v1602_v61 = vmax.f32 %v3646_v46, %v3648_v53 }
 0x757   : > { %v3654_v1 = vpop.f32.mrb[35].mxu1 }
 0x758   : > { %1603 = vmax.xlane.f32.xlu1 %v1602_v61  ;;  %v1605_v3 = vmax.f32 %v3650_v59, %v3654_v1 }
 0x75a   : > { %1606 = vmax.xlane.f32.xlu0 %v1605_v3 }
 0x75c   : > { %v3658_v6 = vpop.f32.mrb[36].mxu1 }
 0x75d   : > { %v3660_v12 = vpop.f32.mrb[37].mxu1 }
 0x75e   : > { %v3662_v16 = vpop.f32.mrb[38].mxu1  ;;  %v1608_v20 = vmax.f32 %v3658_v6, %v3660_v12 }
 0x75f   : > { %v3666_v19 = vpop.f32.mrb[39].mxu1 }
 0x760   : > { %4381 = vst [vmem:[#allocation29_spill] sm:$0xff] %v3666_v19  ;;  %1609 = vmax.xlane.f32.xlu1 %v1608_v20  ;;  %v1611_v33 = vmax.f32 %v3662_v16, %v3666_v19 }
 0x762   : > { %1612 = vmax.xlane.f32.xlu0 %v1611_v33 }
 0x764   : > { %v3670_v37 = vpop.f32.mrb[40].mxu1 }
 0x765   : > { %4382 = vst [vmem:[#allocation30_spill] sm:$0xff] %v3670_v37  ;;  %v3672_v34 = vpop.f32.mrb[41].mxu1 }
 0x766   : > { %4383 = vst [vmem:[#allocation31_spill] sm:$0xff] %v3672_v34  ;;  %v3674_v61 = vpop.f32.mrb[42].mxu1  ;;  %v1614_v3 = vmax.f32 %v3670_v37, %v3672_v34 }
 0x767   : > { %4384 = vst [vmem:[#allocation32_spill] sm:$0xff] %v3674_v61  ;;  %v3678_v58 = vpop.f32.mrb[43].mxu1 }
 0x768   : > { %4385 = vst [vmem:[#allocation33_spill] sm:$0xff] %v3678_v58  ;;  %v1617_v11 = vmax.f32 %v3674_v61, %v3678_v58  ;;  %1615 = vmax.xlane.f32.xlu1 %v1614_v3 }
 0x76a   : > { %1618 = vmax.xlane.f32.xlu0 %v1617_v11 }
 0x76c   : > { %v3682_v20 = vpop.f32.mrb[44].mxu1 }
 0x76d   : > { %4386 = vst [vmem:[#allocation34_spill] sm:$0xff] %v3682_v20  ;;  %v3684_v9 = vpop.f32.mrb[45].mxu1 }
 0x76e   : > { %4387 = vst [vmem:[#allocation35_spill] sm:$0xff] %v3684_v9  ;;  %v1620_v33 = vmax.f32 %v3682_v20, %v3684_v9  ;;  %v3688_v47 = vpop.f32.mrb[46].mxu1 }
 0x76f   : > { %4388 = vst [vmem:[#allocation36_spill] sm:$0xff] %v3688_v47  ;;  %v3690_v54 = vpop.f32.mrb[47].mxu1 }
 0x770   : > { %4389 = vst [vmem:[#allocation37_spill] sm:$0xff] %v3690_v54  ;;  %v1623_v48 = vmax.f32 %v3688_v47, %v3690_v54  ;;  %1621 = vmax.xlane.f32.xlu1 %v1620_v33 }
 0x772   : > { %1624 = vmax.xlane.f32.xlu0 %v1623_v48 }
 0x774   : > { %v3694_v40 = vpop.f32.mrb[48].mxu1 }
 0x775   : > { %4390 = vst [vmem:[#allocation38_spill] sm:$0xff] %v3694_v40  ;;  %v3696_v3 = vpop.f32.mrb[49].mxu1 }
 0x776   : > { %4391 = vst [vmem:[#allocation39_spill] sm:$0xff] %v3696_v3  ;;  %v1626_v11 = vmax.f32 %v3694_v40, %v3696_v3  ;;  %v3700_v49 = vpop.f32.mrb[50].mxu1  ;;  %v2813_v40 = vld [vmem:[%s4257_s7 + $0x8] ss:$0 sps:$4 sm:$0xff]  }
 0x777   : > { %4392 = vst [vmem:[#allocation40_spill] sm:$0xff] %v3700_v49  ;;  %v3702_v41 = vpop.f32.mrb[51].mxu1  ;;  %2539 = vmatmul.mubr.msk.bf16.gmra.mrb[12].mxu0 %vm1211_vm5, %v2813_v40 }
 0x778   : > { %4393 = vst [vmem:[#allocation41_spill] sm:$0xff] %v3702_v41  ;;  %v1629_v29 = vmax.f32 %v3700_v49, %v3702_v41  ;;  %1627 = vmax.xlane.f32.xlu1 %v1626_v11 }
 0x77a   : > { %1630 = vmax.xlane.f32.xlu0 %v1629_v29 }
 0x77c   : > { %v3706_v36 = vpop.f32.mrb[52].mxu1 }
 0x77d   : > { %v3708_v33 = vpop.f32.mrb[53].mxu1 }
 0x77e   : > { %v3712_v25 = vpop.f32.mrb[54].mxu1 }
 0x77f   : > { %v3714_v31 = vpop.f32.mrb[55].mxu1 }
 0x784   : > { %v3718_v30 = vpop.f32.mrb[56].mxu1 }
 0x785   : > { %v3720_v26 = vpop.f32.mrb[57].mxu1 }
 0x786   : > { %v3724_v11 = vpop.f32.mrb[58].mxu1 }
 0x787   : > { %v3726_v27 = vpop.f32.mrb[59].mxu1 }
 0x78c   : > { %v3730_v24 = vpop.f32.mrb[60].mxu1 }
 0x78d   : > { %v3732_v50 = vpop.f32.mrb[61].mxu1 }
 0x78e   : > { %v3736_v57 = vpop.f32.mrb[62].mxu1 }
 0x78f   : > { %v3738_v32 = vpop.f32.mrb[63].mxu1 }
 0x794   : > { %v3742_v22 = vpop.f32.mrb[64].mxu1 }
 0x795   : > { %v3744_v41 = vpop.f32.mrb[65].mxu1 }
 0x796   : > { %v3748_v49 = vpop.f32.mrb[66].mxu1 }
 0x797   : > { %v3750_v3 = vpop.f32.mrb[67].mxu1 }
 0x7ad   : > { %v1562_v29 = vpop.xlane.xlu0 %1561 }
 0x7ae   : > { %v1656_v54 = vsub.f32 %v3562_v43, %v1562_v29  ;;  %v1657_v47 = vsub.f32 %v3564_v44, %v1562_v29 }
 0x7af   : > { %v1565_v9 = vpop.xlane.xlu1 %1564 }
 0x7b0   : > { %v1720_v48 = vmul.f32 1.442695, %v1656_v54  ;;  %v1722_v20 = vmul.f32 1.442695, %v1657_v47  ;;  %v1658_v58 = vsub.f32 %v3566_v45, %v1565_v9  ;;  %v1659_v61 = vsub.f32 %v3570_v51, %v1565_v9 }
 0x7b2   : > { %2814 = vpow2.f32 %v1720_v48  ;;  %v1724_v23 = vmul.f32 1.442695, %v1658_v58  ;;  %v1726_v34 = vmul.f32 1.442695, %v1659_v61 }
 0x7b3   : > { %2816 = vpow2.f32 %v1722_v20 }
 0x7b4   : > { %2818 = vpow2.f32 %v1724_v23 }
 0x7b5   : > { %2820 = vpow2.f32 %v1726_v34  ;;  %v1568_v37 = vpop.xlane.xlu0 %1567 }
 0x7b6   : > { %v1660_v40 = vsub.f32 %v3574_v55, %v1568_v37  ;;  %v1661_v43 = vsub.f32 %v3576_v56, %v1568_v37 }
 0x7b8   : > { %v1728_v19 = vmul.f32 1.442695, %v1660_v40  ;;  %v1730_v44 = vmul.f32 1.442695, %v1661_v43 }
 0x7b9   : > { %v1571_v29 = vpop.xlane.xlu0 %1570 }
 0x7ba   : > { %2822 = vpow2.f32 %v1728_v19  ;;  %v1662_v47 = vsub.f32 %v3578_v52, %v1571_v29  ;;  %v1663_v54 = vsub.f32 %v3582_v60, %v1571_v29 }
 0x7bb   : > { %2824 = vpow2.f32 %v1730_v44  ;;  %v4394_v44 = vmax.f32 %v3706_v36, %v3708_v33 }
 0x7bc   : > { %v3766_v9 = vpop.eup %2814  ;;  %v1732_v58 = vmul.f32 1.442695, %v1662_v47  ;;  %v1734_v45 = vmul.f32 1.442695, %v1663_v54 }
 0x7bd   : > { %v3768_v23 = vpop.eup %2816  ;;  %v1574_v51 = vpop.xlane.xlu1 %1573 }
 0x7be   : > { %v3770_v34 = vpop.eup %2818  ;;  %2826 = vpow2.f32 %v1732_v58  ;;  %v1664_v55 = vsub.f32 %v3586_v62, %v1574_v51  ;;  %v1665_v56 = vsub.f32 %v3588_v63, %v1574_v51  ;;  %v1848_v52 = vadd.f32 %v3768_v23, %v3766_v9 }
 0x7bf   : > { %v3776_v19 = vpop.eup %2820  ;;  %2828 = vpow2.f32 %v1734_v45  ;;  %v1577_v60 = vpop.xlane.xlu0 %1576  ;;  %v4395_v58 = vmax.f32 %v3712_v25, %v3714_v31 }
 0x7c0   : > { %v1736_v37 = vmul.f32 1.442695, %v1664_v55  ;;  %v1738_v61 = vmul.f32 1.442695, %v1665_v56  ;;  %1849 = vadd.xlane.f32.xlu1 %v1848_v52  ;;  %v1666_v20 = vsub.f32 %v3590_v0, %v1577_v60  ;;  %v1667_v48 = vsub.f32 %v3594_v2, %v1577_v60 }
 0x7c1   : > { %v1851_v40 = vadd.f32 %v3776_v19, %v3770_v34 }
 0x7c2   : > { %2830 = vpow2.f32 %v1736_v37  ;;  %v1740_v62 = vmul.f32 1.442695, %v1666_v20  ;;  %v1742_v63 = vmul.f32 1.442695, %v1667_v48  ;;  %v4396_v48 = vmax.f32 %v3718_v30, %v3720_v26 }
 0x7c3   : > { %2832 = vpow2.f32 %v1738_v61  ;;  %1852 = vadd.xlane.f32.xlu0 %v1851_v40 }
 0x7c4   : > { %v3782_v43 = vpop.eup %2822  ;;  %2834 = vpow2.f32 %v1740_v62  ;;  %1633 = vmax.xlane.f32.xlu1 %v4394_v44 }
 0x7c5   : > { %v3787_v29 = vpop.eup %2824  ;;  %2836 = vpow2.f32 %v1742_v63  ;;  %v1580_v0 = vpop.xlane.xlu1 %1579 }
 0x7c6   : > { %v1668_v2 = vsub.f32 %v3598_v5, %v1580_v0  ;;  %v1669_v47 = vsub.f32 %v3600_v7, %v1580_v0  ;;  %v1854_v54 = vadd.f32 %v3787_v29, %v3782_v43 }
 0x7c7   : > { %1636 = vmax.xlane.f32.xlu0 %v4395_v58  ;;  %v1583_v45 = vpop.xlane.xlu0 %1582  ;;  %v4397_v58 = vmax.f32 %v3724_v11, %v3726_v27 }
 0x7c8   : > { %v3796_v51 = vpop.eup %2826  ;;  %v1744_v55 = vmul.f32 1.442695, %v1668_v2  ;;  %v1746_v56 = vmul.f32 1.442695, %v1669_v47  ;;  %1855 = vadd.xlane.f32.xlu1 %v1854_v54  ;;  %v1670_v52 = vsub.f32 %v3602_v8, %v1583_v45  ;;  %v1671_v60 = vsub.f32 %v3606_v10, %v1583_v45 }
 0x7c9   : > { %v3800_v5 = vpop.eup %2828 }
 0x7ca   : > { %2838 = vpow2.f32 %v1744_v55  ;;  %v1748_v7 = vmul.f32 1.442695, %v1670_v52  ;;  %v1750_v37 = vmul.f32 1.442695, %v1671_v60  ;;  %v1857_v61 = vadd.f32 %v3800_v5, %v3796_v51 }
 0x7cb   : > { %2840 = vpow2.f32 %v1746_v56  ;;  %v4398_v60 = vmax.f32 %v3730_v24, %v3732_v50 }
 0x7cc   : > { %v3804_v20 = vpop.eup %2830  ;;  %2842 = vpow2.f32 %v1748_v7  ;;  %1639 = vmax.xlane.f32.xlu1 %v4396_v48  ;;  %1858 = vadd.xlane.f32.xlu0 %v1857_v61 }
 0x7cd   : > { %v3809_v8 = vpop.eup %2832  ;;  %2844 = vpow2.f32 %v1750_v37  ;;  %v1586_v10 = vpop.xlane.xlu1 %1585 }
 0x7ce   : > { %v3811_v40 = vpop.eup %2834  ;;  %v1672_v62 = vsub.f32 %v3610_v13, %v1586_v10  ;;  %v1673_v63 = vsub.f32 %v3612_v4, %v1586_v10  ;;  %v1860_v44 = vadd.f32 %v3809_v8, %v3804_v20 }
 0x7cf   : > { %v3817_v0 = vpop.eup %2836  ;;  %v1589_v2 = vpop.xlane.xlu0 %1588 }
 0x7d0   : > { %v1752_v47 = vmul.f32 1.442695, %v1672_v62  ;;  %v1754_v54 = vmul.f32 1.442695, %v1673_v63  ;;  %1861 = vadd.xlane.f32.xlu1 %v1860_v44  ;;  %1642 = vmax.xlane.f32.xlu0 %v4397_v58  ;;  %v1674_v45 = vsub.f32 %v3614_v14, %v1589_v2  ;;  %v1675_v55 = vsub.f32 %v3618_v18, %v1589_v2 }
 0x7d1   : > { %v1863_v56 = vadd.f32 %v3817_v0, %v3811_v40  ;;  %v4399_v2 = vmax.f32 %v3736_v57, %v3738_v32 }
 0x7d2   : > { %2846 = vpow2.f32 %v1752_v47  ;;  %v1756_v13 = vmul.f32 1.442695, %v1674_v45  ;;  %v1758_v4 = vmul.f32 1.442695, %v1675_v55  ;;  %v4400_v55 = vmax.f32 %v3742_v22, %v3744_v41 }
 0x7d3   : > { %2848 = vpow2.f32 %v1754_v54 }
 0x7d4   : > { %v3826_v52 = vpop.eup %2838  ;;  %2850 = vpow2.f32 %v1756_v13  ;;  %1645 = vmax.xlane.f32.xlu1 %v4398_v60  ;;  %1864 = vadd.xlane.f32.xlu0 %v1863_v56 }
 0x7d5   : > { %v3831_v7 = vpop.eup %2840  ;;  %2852 = vpow2.f32 %v1758_v4  ;;  %v1592_v14 = vpop.xlane.xlu1 %1591 }
 0x7d6   : > { %v3833_v18 = vpop.eup %2842  ;;  %v1676_v37 = vsub.f32 %v3622_v17, %v1592_v14  ;;  %v1677_v61 = vsub.f32 %v3624_v21, %v1592_v14  ;;  %v1866_v48 = vadd.f32 %v3831_v7, %v3826_v52 }
 0x7d7   : > { %v3839_v10 = vpop.eup %2844  ;;  %v1595_v62 = vpop.xlane.xlu0 %1594 }
 0x7d8   : > { %v1760_v63 = vmul.f32 1.442695, %v1676_v37  ;;  %v1762_v44 = vmul.f32 1.442695, %v1677_v61  ;;  %1867 = vadd.xlane.f32.xlu1 %v1866_v48  ;;  %1648 = vmax.xlane.f32.xlu0 %v4399_v2  ;;  %v1678_v47 = vsub.f32 %v3626_v15, %v1595_v62  ;;  %v1679_v54 = vsub.f32 %v3630_v28, %v1595_v62 }
 0x7d9   : > { %v1869_v58 = vadd.f32 %v3839_v10, %v3833_v18  ;;  %v4401_v62 = vmax.f32 %v3748_v49, %v3750_v3 }
 0x7da   : > { %2854 = vpow2.f32 %v1760_v63  ;;  %v1764_v17 = vmul.f32 1.442695, %v1678_v47  ;;  %v1766_v21 = vmul.f32 1.442695, %v1679_v54 }
 0x7db   : > { %2856 = vpow2.f32 %v1762_v44 }
 0x7dc   : > { %v3848_v45 = vpop.eup %2846  ;;  %2858 = vpow2.f32 %v1764_v17  ;;  %1651 = vmax.xlane.f32.xlu1 %v4400_v55  ;;  %1870 = vadd.xlane.f32.xlu0 %v1869_v58 }
 0x7dd   : > { %v3853_v13 = vpop.eup %2848  ;;  %2860 = vpow2.f32 %v1766_v21  ;;  %v1598_v15 = vpop.xlane.xlu1 %1597 }
 0x7de   : > { %v3855_v28 = vpop.eup %2850  ;;  %v1680_v4 = vsub.f32 %v3634_v35, %v1598_v15  ;;  %v1681_v56 = vsub.f32 %v3636_v38, %v1598_v15  ;;  %v1872_v60 = vadd.f32 %v3853_v13, %v3848_v45 }
 0x7df   : > { %v3861_v14 = vpop.eup %2852  ;;  %v1601_v37 = vpop.xlane.xlu0 %1600 }
 0x7e0   : > { %v1768_v61 = vmul.f32 1.442695, %v1680_v4  ;;  %v1770_v48 = vmul.f32 1.442695, %v1681_v56  ;;  %1873 = vadd.xlane.f32.xlu1 %v1872_v60  ;;  %1654 = vmax.xlane.f32.xlu0 %v4401_v62  ;;  %v1682_v63 = vsub.f32 %v3638_v39, %v1601_v37  ;;  %v1683_v44 = vsub.f32 %v3642_v42, %v1601_v37 }
 0x7e1   : > { %v1875_v2 = vadd.f32 %v3861_v14, %v3855_v28 }
 0x7e2   : > { %2862 = vpow2.f32 %v1768_v61  ;;  %v1772_v35 = vmul.f32 1.442695, %v1682_v63  ;;  %v1774_v38 = vmul.f32 1.442695, %v1683_v44 }
 0x7e3   : > { %2864 = vpow2.f32 %v1770_v48 }
 0x7e4   : > { %v3870_v47 = vpop.eup %2854  ;;  %2866 = vpow2.f32 %v1772_v35  ;;  %1876 = vadd.xlane.f32.xlu0 %v1875_v2 }
 0x7e5   : > { %v3872_v54 = vpop.eup %2856  ;;  %2868 = vpow2.f32 %v1774_v38  ;;  %v1604_v17 = vpop.xlane.xlu1 %1603 }
 0x7e6   : > { %v3874_v21 = vpop.eup %2858  ;;  %v1684_v39 = vsub.f32 %v3646_v46, %v1604_v17  ;;  %v1685_v42 = vsub.f32 %v3648_v53, %v1604_v17  ;;  %v1878_v58 = vadd.f32 %v3872_v54, %v3870_v47 }
 0x7e7   : > { %v3880_v55 = vpop.eup %2860  ;;  %v1607_v15 = vpop.xlane.xlu0 %1606 }
 0x7e8   : > { %v1776_v4 = vmul.f32 1.442695, %v1684_v39  ;;  %v1778_v56 = vmul.f32 1.442695, %v1685_v42  ;;  %1879 = vadd.xlane.f32.xlu1 %v1878_v58  ;;  %v1686_v60 = vsub.f32 %v3650_v59, %v1607_v15  ;;  %v1687_v37 = vsub.f32 %v3654_v1, %v1607_v15  ;;  %v4402_v58 = vld [vmem:[#allocation29_spill] sm:$0xff] }
 0x7e9   : > { %v1881_v61 = vadd.f32 %v3880_v55, %v3874_v21 }
 0x7ea   : > { %2870 = vpow2.f32 %v1776_v4  ;;  %v1780_v46 = vmul.f32 1.442695, %v1686_v60  ;;  %v1782_v48 = vmul.f32 1.442695, %v1687_v37 }
 0x7eb   : > { %2872 = vpow2.f32 %v1778_v56  ;;  %1882 = vadd.xlane.f32.xlu0 %v1881_v61 }
 0x7ec   : > { %v3886_v53 = vpop.eup %2862  ;;  %2874 = vpow2.f32 %v1780_v46 }
 0x7ed   : > { %v3888_v62 = vpop.eup %2864  ;;  %2876 = vpow2.f32 %v1782_v48  ;;  %v1610_v63 = vpop.xlane.xlu1 %1609  ;;  %v4406_v48 = vld [vmem:[#allocation31_spill] sm:$0xff] }
 0x7ee   : > { %v3890_v44 = vpop.eup %2866  ;;  %v1688_v59 = vsub.f32 %v3658_v6, %v1610_v63  ;;  %v1689_v1 = vsub.f32 %v3660_v12, %v1610_v63  ;;  %v1884_v35 = vadd.f32 %v3888_v62, %v3886_v53 }
 0x7ef   : > { %v3896_v38 = vpop.eup %2868  ;;  %v1613_v2 = vpop.xlane.xlu0 %1612 }
 0x7f0   : > { %v1784_v17 = vmul.f32 1.442695, %v1688_v59  ;;  %v1786_v39 = vmul.f32 1.442695, %v1689_v1  ;;  %1885 = vadd.xlane.f32.xlu1 %v1884_v35  ;;  %v1690_v42 = vsub.f32 %v3662_v16, %v1613_v2  ;;  %v1691_v15 = vsub.f32 %v4402_v58, %v1613_v2  ;;  %v4405_v16 = vld [vmem:[#allocation30_spill] sm:$0xff]  ;;  %v4409_v58 = vld [vmem:[#allocation33_spill] sm:$0xff] }
 0x7f1   : > { %v1887_v4 = vadd.f32 %v3896_v38, %v3890_v44 }
 0x7f2   : > { %2878 = vpow2.f32 %v1784_v17  ;;  %v1788_v6 = vmul.f32 1.442695, %v1690_v42  ;;  %v1790_v56 = vmul.f32 1.442695, %v1691_v15 }
 0x7f3   : > { %2880 = vpow2.f32 %v1786_v39  ;;  %1888 = vadd.xlane.f32.xlu0 %v1887_v4  ;;  %v4408_v39 = vld [vmem:[#allocation32_spill] sm:$0xff] }
 0x7f4   : > { %v3902_v12 = vpop.eup %2870  ;;  %2882 = vpow2.f32 %v1788_v6 }
 0x7f5   : > { %4403 = vst [vmem:[#allocation29_spill] sm:$0xff] %v3902_v12  ;;  %v3904_v60 = vpop.eup %2872  ;;  %2884 = vpow2.f32 %v1790_v56  ;;  %v1616_v37 = vpop.xlane.xlu1 %1615 }
 0x7f6   : > { %v3906_v61 = vpop.eup %2874  ;;  %v1692_v46 = vsub.f32 %v4405_v16, %v1616_v37  ;;  %v1693_v63 = vsub.f32 %v4406_v48, %v1616_v37  ;;  %v1890_v59 = vadd.f32 %v3904_v60, %v3902_v12  ;;  %v4417_v12 = vld [vmem:[#allocation37_spill] sm:$0xff] }
 0x7f7   : > { %4404 = vst [vmem:[#allocation42_spill] sm:$0xff] %v3906_v61  ;;  %v3912_v1 = vpop.eup %2876  ;;  %v1619_v35 = vpop.xlane.xlu0 %1618 }
 0x7f8   : > { %4407 = vst [vmem:[#allocation30_spill] sm:$0xff] %v3912_v1  ;;  %v1792_v2 = vmul.f32 1.442695, %v1692_v46  ;;  %v1794_v17 = vmul.f32 1.442695, %v1693_v63  ;;  %1891 = vadd.xlane.f32.xlu1 %v1890_v59  ;;  %v1694_v42 = vsub.f32 %v4408_v39, %v1619_v35  ;;  %v1695_v15 = vsub.f32 %v4409_v58, %v1619_v35  ;;  %v4413_v63 = vld [vmem:[#allocation34_spill] sm:$0xff] }
 0x7f9   : > { %v1893_v4 = vadd.f32 %v3912_v1, %v3906_v61  ;;  %v4414_v35 = vld [vmem:[#allocation35_spill] sm:$0xff] }
 0x7fa   : > { %2886 = vpow2.f32 %v1792_v2  ;;  %v1796_v6 = vmul.f32 1.442695, %v1694_v42  ;;  %v1798_v56 = vmul.f32 1.442695, %v1695_v15 }
 0x7fb   : > { %2888 = vpow2.f32 %v1794_v17  ;;  %1894 = vadd.xlane.f32.xlu0 %v1893_v4  ;;  %v4416_v4 = vld [vmem:[#allocation36_spill] sm:$0xff] }
 0x7fc   : > { %v3918_v37 = vpop.eup %2878  ;;  %2890 = vpow2.f32 %v1796_v6 }
 0x7fd   : > { %4410 = vst [vmem:[#allocation31_spill] sm:$0xff] %v3918_v37  ;;  %v3920_v16 = vpop.eup %2880  ;;  %2892 = vpow2.f32 %v1798_v56  ;;  %v1622_v46 = vpop.xlane.xlu1 %1621 }
 0x7fe   : > { %4411 = vst [vmem:[#allocation32_spill] sm:$0xff] %v3920_v16  ;;  %v3922_v48 = vpop.eup %2882  ;;  %v1696_v59 = vsub.f32 %v4413_v63, %v1622_v46  ;;  %v1697_v39 = vsub.f32 %v4414_v35, %v1622_v46  ;;  %v1896_v2 = vadd.f32 %v3920_v16, %v3918_v37 }
 0x7ff   : > { %4412 = vst [vmem:[#allocation33_spill] sm:$0xff] %v3922_v48  ;;  %v3928_v42 = vpop.eup %2884  ;;  %v1625_v17 = vpop.xlane.xlu0 %1624 }
 0x800   : > { %4415 = vst [vmem:[#allocation34_spill] sm:$0xff] %v3928_v42  ;;  %v1800_v58 = vmul.f32 1.442695, %v1696_v59  ;;  %v1802_v15 = vmul.f32 1.442695, %v1697_v39  ;;  %1897 = vadd.xlane.f32.xlu1 %v1896_v2  ;;  %v1698_v6 = vsub.f32 %v4416_v4, %v1625_v17  ;;  %v1699_v56 = vsub.f32 %v4417_v12, %v1625_v17  ;;  %v4418_v2 = vld [vmem:[#allocation38_spill] sm:$0xff] }
 0x801   : > { %v1899_v61 = vadd.f32 %v3928_v42, %v3922_v48  ;;  %v4419_v12 = vld [vmem:[#allocation39_spill] sm:$0xff]  ;;  %v4421_v48 = vld [vmem:[#allocation41_spill] sm:$0xff] }
 0x802   : > { %2894 = vpow2.f32 %v1800_v58  ;;  %v1804_v63 = vmul.f32 1.442695, %v1698_v6  ;;  %v1806_v1 = vmul.f32 1.442695, %v1699_v56 }
 0x803   : > { %2896 = vpow2.f32 %v1802_v15  ;;  %1900 = vadd.xlane.f32.xlu0 %v1899_v61 }
 0x804   : > { %v3934_v46 = vpop.eup %2886  ;;  %2898 = vpow2.f32 %v1804_v63  ;;  %v4420_v63 = vld [vmem:[#allocation40_spill] sm:$0xff] }
 0x805   : > { %v3936_v35 = vpop.eup %2888  ;;  %2900 = vpow2.f32 %v1806_v1  ;;  %v1628_v59 = vpop.xlane.xlu1 %1627 }
 0x806   : > { %v3938_v39 = vpop.eup %2890  ;;  %v1700_v4 = vsub.f32 %v4418_v2, %v1628_v59  ;;  %v1701_v17 = vsub.f32 %v4419_v12, %v1628_v59  ;;  %v1902_v58 = vadd.f32 %v3936_v35, %v3934_v46 }
 0x807   : > { %v3944_v6 = vpop.eup %2892  ;;  %v1631_v15 = vpop.xlane.xlu0 %1630 }
 0x808   : > { %v1808_v61 = vmul.f32 1.442695, %v1700_v4  ;;  %v1810_v56 = vmul.f32 1.442695, %v1701_v17  ;;  %1903 = vadd.xlane.f32.xlu1 %v1902_v58  ;;  %v1702_v37 = vsub.f32 %v4420_v63, %v1631_v15  ;;  %v1703_v1 = vsub.f32 %v4421_v48, %v1631_v15 }
 0x809   : > { %v1905_v42 = vadd.f32 %v3944_v6, %v3938_v39 }
 0x80a   : > { %2902 = vpow2.f32 %v1808_v61  ;;  %v1812_v2 = vmul.f32 1.442695, %v1702_v37  ;;  %v1814_v16 = vmul.f32 1.442695, %v1703_v1 }
 0x80b   : > { %2904 = vpow2.f32 %v1810_v56  ;;  %1906 = vadd.xlane.f32.xlu0 %v1905_v42 }
 0x80c   : > { %v3950_v59 = vpop.eup %2894  ;;  %2906 = vpow2.f32 %v1812_v2 }
 0x80d   : > { %4422 = vst [vmem:[#allocation35_spill] sm:$0xff] %v3950_v59  ;;  %v3952_v12 = vpop.eup %2896  ;;  %2908 = vpow2.f32 %v1814_v16 }
 0x80e   : > { %v3954_v4 = vpop.eup %2898  ;;  %v1908_v17 = vadd.f32 %v3952_v12, %v3950_v59 }
 0x80f   : > { %4423 = vst [vmem:[#allocation36_spill] sm:$0xff] %v3954_v4  ;;  %v3958_v48 = vpop.eup %2900 }
 0x810   : > { %4424 = vst [vmem:[#allocation37_spill] sm:$0xff] %v3958_v48  ;;  %1909 = vadd.xlane.f32.xlu1 %v1908_v17  ;;  %v1911_v37 = vadd.f32 %v3958_v48, %v3954_v4 }
 0x812   : > { %1912 = vadd.xlane.f32.xlu0 %v1911_v37 }
 0x814   : > { %v3962_v58 = vpop.eup %2902 }
 0x815   : > { %4425 = vst [vmem:[#allocation38_spill] sm:$0xff] %v3962_v58  ;;  %v3964_v42 = vpop.eup %2904 }
 0x816   : > { %4426 = vst [vmem:[#allocation39_spill] sm:$0xff] %v3964_v42  ;;  %v3966_v15 = vpop.eup %2906  ;;  %v1914_v16 = vadd.f32 %v3964_v42, %v3962_v58 }
 0x817   : > { %4427 = vst [vmem:[#allocation40_spill] sm:$0xff] %v3966_v15  ;;  %v3970_v61 = vpop.eup %2908 }
 0x818   : > { %4428 = vst [vmem:[#allocation41_spill] sm:$0xff] %v3970_v61  ;;  %1915 = vadd.xlane.f32.xlu1 %v1914_v16  ;;  %v1917_v56 = vadd.f32 %v3970_v61, %v3966_v15 }
 0x81a   : > { %1918 = vadd.xlane.f32.xlu0 %v1917_v56 }
 0x84d   : > { %v1850_v63 = vpop.xlane.xlu1 %1849 }
 0x84e   : > { %2910 = vrcp.f32 %v1850_v63 }
 0x850   : > { %v1853_v1 = vpop.xlane.xlu0 %1852 }
 0x851   : > { %2912 = vrcp.f32 %v1853_v1  ;;  %v1634_v2 = vpop.xlane.xlu1 %1633 }
 0x852   : > { %v1704_v17 = vsub.f32 %v3706_v36, %v1634_v2  ;;  %v1705_v37 = vsub.f32 %v3708_v33, %v1634_v2 }
 0x854   : > { %v1816_v59 = vmul.f32 1.442695, %v1704_v17  ;;  %v1818_v4 = vmul.f32 1.442695, %v1705_v37  ;;  %v1637_v48 = vpop.xlane.xlu0 %1636 }
 0x855   : > { %v1706_v58 = vsub.f32 %v3712_v25, %v1637_v48  ;;  %v1707_v16 = vsub.f32 %v3714_v31, %v1637_v48  ;;  %v1856_v42 = vpop.xlane.xlu1 %1855 }
 0x856   : > { %2914 = vpow2.f32 %v1816_v59 }
 0x857   : > { %2916 = vpow2.f32 %v1818_v4  ;;  %v1820_v56 = vmul.f32 1.442695, %v1706_v58  ;;  %v1822_v15 = vmul.f32 1.442695, %v1707_v16 }
 0x858   : > { %v2911_v63 = vpop.eup %2910  ;;  %2918 = vrcp.f32 %v1856_v42 }
 0x859   : > { %2920 = vpow2.f32 %v1820_v56  ;;  %v1640_v1 = vpop.xlane.xlu1 %1639  ;;  %v1859_v61 = vpop.xlane.xlu0 %1858  ;;  %v1977_v25 = vmul.f32 %v2911_v63, %v3768_v23  ;;  %v1976_v17 = vmul.f32 %v2911_v63, %v3766_v9 }
 0x85a   : > { %2922 = vpow2.f32 %v1822_v15  ;;  %v1708_v36 = vsub.f32 %v3718_v30, %v1640_v1  ;;  %v1709_v33 = vsub.f32 %v3720_v26, %v1640_v1 }
 0x85b   : > { %v2913_v2 = vpop.eup %2912  ;;  %2924 = vrcp.f32 %v1859_v61 }
 0x85c   : > { %v1824_v31 = vmul.f32 1.442695, %v1708_v36  ;;  %v1826_v48 = vmul.f32 1.442695, %v1709_v33  ;;  %v1979_v59 = vmul.f32 %v2913_v2, %v3776_v19  ;;  %v1978_v4 = vmul.f32 %v2913_v2, %v3770_v34 }
 0x85d   : > { %v1862_v58 = vpop.xlane.xlu1 %1861  ;;  %v1643_v42 = vpop.xlane.xlu0 %1642 }
 0x85e   : > { %2926 = vpow2.f32 %v1824_v31  ;;  %v1710_v15 = vsub.f32 %v3724_v11, %v1643_v42  ;;  %v1711_v30 = vsub.f32 %v3726_v27, %v1643_v42  ;;  %v2041_v26 = vpack.c.bf16 %v1979_v59, %v1977_v25 }
 0x85f   : > { %2928 = vpow2.f32 %v1826_v48  ;;  %v2040_v61 = vpack.c.bf16 %v1978_v4, %v1976_v17 }
 0x860   : > { %v3986_v37 = vpop.eup %2914  ;;  %2930 = vrcp.f32 %v1862_v58  ;;  %v1828_v23 = vmul.f32 1.442695, %v1710_v15  ;;  %v1830_v16 = vmul.f32 1.442695, %v1711_v30  ;;  %2072 = vmatprep.subr.bf16.mxu0 %v2041_v26 }
 0x861   : > { %v3988_v19 = vpop.eup %2916  ;;  %2073 = vmatpush1.bf16.xpose.msra.mxu0 %v2040_v61  ;;  %v1646_v34 = vpop.xlane.xlu1 %1645 }
 0x862   : > { %v1865_v56 = vpop.xlane.xlu0 %1864  ;;  %v2919_v9 = vpop.eup %2918  ;;  %2932 = vpow2.f32 %v1828_v23  ;;  %v1712_v11 = vsub.f32 %v3730_v24, %v1646_v34  ;;  %v1713_v27 = vsub.f32 %v3732_v50, %v1646_v34  ;;  %v1920_v63 = vadd.f32 %v3988_v19, %v3986_v37 }
 0x863   : > { %v3994_v1 = vpop.eup %2920  ;;  %2934 = vpow2.f32 %v1830_v16  ;;  %v1981_v50 = vmul.f32 %v2919_v9, %v3787_v29  ;;  %v1980_v42 = vmul.f32 %v2919_v9, %v3782_v43 }
 0x864   : > { %v3996_v36 = vpop.eup %2922  ;;  %v1832_v33 = vmul.f32 1.442695, %v1712_v11  ;;  %v1834_v2 = vmul.f32 1.442695, %v1713_v27  ;;  %2936 = vrcp.f32 %v1865_v56  ;;  %1921 = vadd.xlane.f32.xlu1 %v1920_v63 }
 0x865   : > { %v2925_v25 = vpop.eup %2924  ;;  %v1868_v31 = vpop.xlane.xlu1 %1867  ;;  %v1923_v48 = vadd.f32 %v3996_v36, %v3994_v1 }
 0x866   : > { %v1649_v24 = vpop.xlane.xlu0 %1648  ;;  %2938 = vpow2.f32 %v1832_v33  ;;  %v1983_v58 = vmul.f32 %v2925_v25, %v3800_v5  ;;  %v1982_v17 = vmul.f32 %v2925_v25, %v3796_v51 }
 0x867   : > { %v1714_v59 = vsub.f32 %v3736_v57, %v1649_v24  ;;  %v1715_v4 = vsub.f32 %v3738_v32, %v1649_v24  ;;  %2940 = vpow2.f32 %v1834_v2  ;;  %1924 = vadd.xlane.f32.xlu0 %v1923_v48 }
 0x868   : > { %v4006_v15 = vpop.eup %2926  ;;  %v2043_v61 = vpack.c.bf16 %v1983_v58, %v1981_v50  ;;  %2942 = vrcp.f32 %v1868_v31  ;;  %v2042_v16 = vpack.c.bf16 %v1982_v17, %v1980_v42 }
 0x869   : > { %v1836_v30 = vmul.f32 1.442695, %v1714_v59  ;;  %v1838_v26 = vmul.f32 1.442695, %v1715_v4  ;;  %v4008_v23 = vpop.eup %2928  ;;  %v1652_v29 = vpop.xlane.xlu1 %1651 }
 0x86a   : > { %v1871_v57 = vpop.xlane.xlu0 %1870  ;;  %v2931_v32 = vpop.eup %2930  ;;  %v1716_v5 = vsub.f32 %v3742_v22, %v1652_v29  ;;  %v1717_v34 = vsub.f32 %v3744_v41, %v1652_v29  ;;  %2074 = vmatprep.subr.bf16.mxu0 %v2043_v61  ;;  %v1926_v43 = vadd.f32 %v4008_v23, %v4006_v15 }
 0x86b   : > { %2944 = vpow2.f32 %v1836_v30  ;;  %2075 = vmatpush1.bf16.xpose.msra.mxu0 %v2042_v16  ;;  %v1985_v63 = vmul.f32 %v2931_v32, %v3809_v8  ;;  %v1984_v48 = vmul.f32 %v2931_v32, %v3804_v20 }
 0x86c   : > { %2946 = vpow2.f32 %v1838_v26  ;;  %v4014_v51 = vpop.eup %2932  ;;  %v1840_v56 = vmul.f32 1.442695, %v1716_v5  ;;  %v1842_v9 = vmul.f32 1.442695, %v1717_v34  ;;  %1927 = vadd.xlane.f32.xlu1 %v1926_v43 }
 0x86d   : > { %2948 = vrcp.f32 %v1871_v57  ;;  %v4016_v11 = vpop.eup %2934  ;;  %v1874_v41 = vpop.xlane.xlu1 %1873 }
 0x86e   : > { %v1655_v27 = vpop.xlane.xlu0 %1654  ;;  %v2937_v22 = vpop.eup %2936  ;;  %2950 = vpow2.f32 %v1840_v56  ;;  %v1929_v25 = vadd.f32 %v4016_v11, %v4014_v51 }
 0x86f   : > { %v1718_v33 = vsub.f32 %v3748_v49, %v1655_v27  ;;  %v1719_v2 = vsub.f32 %v3750_v3, %v1655_v27  ;;  %2952 = vpow2.f32 %v1842_v9  ;;  %v1987_v31 = vmul.f32 %v2937_v22, %v3817_v0 }
 0x870   : > { %v1986_v24 = vmul.f32 %v2937_v22, %v3811_v40  ;;  %v4026_v50 = vpop.eup %2938  ;;  %1930 = vadd.xlane.f32.xlu0 %v1929_v25  ;;  %2954 = vrcp.f32 %v1874_v41 }
 0x871   : > { %v1844_v8 = vmul.f32 1.442695, %v1718_v33  ;;  %v1846_v59 = vmul.f32 1.442695, %v1719_v2  ;;  %v4028_v4 = vpop.eup %2940  ;;  %v2045_v49 = vpack.c.bf16 %v1987_v31, %v1985_v63 }
 0x872   : > { %v1877_v3 = vpop.xlane.xlu0 %1876  ;;  %v2044_v58 = vpack.c.bf16 %v1986_v24, %v1984_v48  ;;  %v1932_v42 = vadd.f32 %v4028_v4, %v4026_v50  ;;  %v2943_v0 = vpop.eup %2942 }
 0x873   : > { %2956 = vpow2.f32 %v1844_v8  ;;  %2076 = vmatprep.subr.bf16.mxu0 %v2045_v49  ;;  %v1989_v61 = vmul.f32 %v2943_v0, %v3831_v7  ;;  %v1988_v57 = vmul.f32 %v2943_v0, %v3826_v52  ;;  %v1187_v0 = vld [vmem:[%s4258_s8 + $0x10] sm:$0xff] }
 0x874   : > { %2958 = vpow2.f32 %v1846_v59  ;;  %2077 = vmatpush1.bf16.xpose.msra.mxu0 %v2044_v58  ;;  %1933 = vadd.xlane.f32.xlu1 %v1932_v42 }
 0x875   : > { %v4032_v20 = vpop.eup %2944  ;;  %2960 = vrcp.f32 %v1877_v3  ;;  %v1880_v17 = vpop.xlane.xlu1 %1879 }
 0x876   : > { %v4034_v40 = vpop.eup %2946  ;;  %2962 = vrcp.f32 %v1880_v17  ;;  %v4065_v17 = vpop.f32.mrb[12].mxu0 }
 0x877   : > { %v2949_v30 = vpop.eup %2948  ;;  %v1935_v26 = vadd.f32 %v4034_v40, %v4032_v20 }
 0x878   : > { %v1991_v29 = vmul.f32 %v2949_v30, %v3839_v10  ;;  %v1990_v16 = vmul.f32 %v2949_v30, %v3833_v18  ;;  %v4042_v32 = vpop.eup %2950  ;;  %v1883_v5 = vpop.xlane.xlu0 %1882 }
 0x879   : > { %1936 = vadd.xlane.f32.xlu0 %v1935_v26  ;;  %v4044_v34 = vpop.eup %2952  ;;  %2964 = vrcp.f32 %v1883_v5 }
 0x87a   : > { %v2047_v43 = vpack.c.bf16 %v1991_v29, %v1989_v61  ;;  %v2046_v56 = vpack.c.bf16 %v1990_v16, %v1988_v57  ;;  %v1938_v9 = vadd.f32 %v4044_v34, %v4042_v32  ;;  %v2955_v7 = vpop.eup %2954  ;;  %v2177_v57 = vld [vmem:[%s4262_s12] sm:$0xff] }
 0x87b   : > { %v1993_v22 = vmul.f32 %v2955_v7, %v3853_v13  ;;  %v1992_v33 = vmul.f32 %v2955_v7, %v3848_v45  ;;  %v2116_v7 = vld [vmem:[%s4260_s10] sm:$0xff] }
 0x87c   : > { %2078 = vmatprep.subr.bf16.mxu0 %v2047_v43  ;;  %1939 = vadd.xlane.f32.xlu1 %v1938_v9 }
 0x87d   : > { %v4048_v27 = vpop.eup %2956  ;;  %2079 = vmatpush1.bf16.xpose.msra.mxu0 %v2046_v56  ;;  %v1886_v18 = vpop.xlane.xlu1 %1885 }
 0x87e   : > { %v4050_v52 = vpop.eup %2958  ;;  %2966 = vrcp.f32 %v1886_v18  ;;  %v4429_v18 = vld [vmem:[#allocation30_spill] sm:$0xff] }
 0x87f   : > { %v2961_v10 = vpop.eup %2960  ;;  %v1941_v63 = vadd.f32 %v4050_v52, %v4048_v27 }
 0x880   : > { %v1995_v41 = vmul.f32 %v2961_v10, %v3861_v14  ;;  %v1994_v2 = vmul.f32 %v2961_v10, %v3855_v28  ;;  %v1889_v25 = vpop.xlane.xlu0 %1888  ;;  %v2963_v31 = vpop.eup %2962 }
 0x881   : > { %1942 = vadd.xlane.f32.xlu0 %v1941_v63  ;;  %2968 = vrcp.f32 %v1889_v25  ;;  %v1997_v59 = vmul.f32 %v2963_v31, %v3872_v54  ;;  %v1996_v28 = vmul.f32 %v2963_v31, %v3870_v47 }
 0x882   : > { %v2049_v48 = vpack.c.bf16 %v1995_v41, %v1993_v22  ;;  %v2048_v24 = vpack.c.bf16 %v1994_v2, %v1992_v33  ;;  %v4430_v22 = vld [vmem:[#allocation42_spill] sm:$0xff]  ;;  %v4431_v2 = vld [vmem:[#allocation29_spill] sm:$0xff] }
 0x883   : > { %v2965_v8 = vpop.eup %2964 }
 0x884   : > { %2080 = vmatprep.subr.bf16.mxu0 %v2049_v48  ;;  %v1999_v13 = vmul.f32 %v2965_v8, %v3880_v55  ;;  %v1998_v14 = vmul.f32 %v2965_v8, %v3874_v21  ;;  %v4067_v55 = vpop.f32.mrb[13].mxu0  ;;  %v4432_v8 = vld [vmem:[#allocation32_spill] sm:$0xff] }
 0x885   : > { %2081 = vmatpush1.bf16.xpose.msra.mxu0 %v2048_v24  ;;  %v1892_v49 = vpop.xlane.xlu1 %1891  ;;  %v1272_v26 = vpop.f32.mrb[14].mxu0 }
 0x886   : > { %v2051_v3 = vpack.c.bf16 %v1999_v13, %v1997_v59  ;;  %2970 = vrcp.f32 %v1892_v49  ;;  %v2050_v42 = vpack.c.bf16 %v1998_v14, %v1996_v28  ;;  %v1273_v61 = vpop.f32.mrb[15].mxu0  ;;  %v4433_v59 = vld [vmem:[#allocation34_spill] sm:$0xff]  ;;  %v4434_v14 = vld [vmem:[#allocation33_spill] sm:$0xff] }
 0x888   : > { %2082 = vmatprep.subr.bf16.mxu0 %v2051_v3  ;;  %v1895_v45 = vpop.xlane.xlu0 %1894  ;;  %v2967_v58 = vpop.eup %2966 }
 0x889   : > { %2972 = vrcp.f32 %v1895_v45  ;;  %v2001_v21 = vmul.f32 %v2967_v58, %v3888_v62  ;;  %v2000_v43 = vmul.f32 %v2967_v58, %v3886_v53  ;;  %v4435_v58 = vld [vmem:[#allocation31_spill] sm:$0xff] }
 0x88b   : > { %v2969_v54 = vpop.eup %2968 }
 0x88c   : > { %v2003_v30 = vmul.f32 %v2969_v54, %v3896_v38  ;;  %v2002_v16 = vmul.f32 %v2969_v54, %v3890_v44  ;;  %v1122_v38 = vld [vmem:[%s4256_s6] sm:$0xff] }
 0x88d   : > { %2083 = vmatpush1.bf16.xpose.msra.mxu0 %v2050_v42  ;;  %1200 = vperm.xlu1 %2690, %v1187_v0   ;;  %v1898_v47 = vpop.xlane.xlu1 %1897 }
 0x88e   : > { %v2053_v29 = vpack.c.bf16 %v2003_v30, %v2001_v21  ;;  %2974 = vrcp.f32 %v1898_v47  ;;  %v2052_v62 = vpack.c.bf16 %v2002_v16, %v2000_v43 }
 0x890   : > { %2084 = vmatprep.subr.bf16.mxu0 %v2053_v29  ;;  %v1901_v5 = vpop.xlane.xlu0 %1900  ;;  %v2971_v56 = vpop.eup %2970 }
 0x891   : > { %2976 = vrcp.f32 %v1901_v5  ;;  %2180 = vperm.xlu1 %2690, %v2177_v57   ;;  %v2005_v44 = vmul.f32 %v2971_v56, %v3904_v60  ;;  %v2004_v25 = vmul.f32 %v2971_v56, %v4431_v2  ;;  %v4441_v2 = vld [vmem:[#allocation40_spill] sm:$0xff] }
 0x893   : > { %v2973_v9 = vpop.eup %2972 }
 0x894   : > { %v2007_v10 = vmul.f32 %v2973_v9, %v4429_v18  ;;  %v2006_v41 = vmul.f32 %v2973_v9, %v4430_v22  ;;  %v4438_v18 = vld [vmem:[#allocation35_spill] sm:$0xff] }
 0x895   : > { %2085 = vmatpush1.bf16.xpose.msra.mxu0 %v2052_v62  ;;  %1125 = vperm.xlu1 %2690, %v1122_v38   ;;  %v1904_v53 = vpop.xlane.xlu1 %1903  ;;  %v4436_v38 = vld [vmem:[#allocation37_spill] sm:$0xff] }
 0x896   : > { %v2055_v63 = vpack.c.bf16 %v2007_v10, %v2005_v44  ;;  %2978 = vrcp.f32 %v1904_v53  ;;  %v2054_v48 = vpack.c.bf16 %v2006_v41, %v2004_v25  ;;  %v4440_v41 = vld [vmem:[#allocation41_spill] sm:$0xff]  ;;  %v4442_v25 = vld [vmem:[#allocation38_spill] sm:$0xff] }
 0x897   : > { %2119 = vperm.xlu0 %2731, %v2116_v7  }
 0x898   : > { %2086 = vmatprep.subr.bf16.mxu0 %v2055_v63  ;;  %v1907_v33 = vpop.xlane.xlu0 %1906  ;;  %v2975_v31 = vpop.eup %2974  ;;  %v4439_v63 = vld [vmem:[#allocation39_spill] sm:$0xff] }
 0x899   : > { %2980 = vrcp.f32 %v1907_v33  ;;  %v2009_v60 = vmul.f32 %v2975_v31, %v4432_v8  ;;  %v2008_v42 = vmul.f32 %v2975_v31, %v4435_v58 }
 0x89b   : > { %v2977_v24 = vpop.eup %2976 }
 0x89c   : > { %v2011_v13 = vmul.f32 %v2977_v24, %v4433_v59  ;;  %v2010_v45 = vmul.f32 %v2977_v24, %v4434_v14 }
 0x89d   : > { %2087 = vmatpush1.bf16.xpose.msra.mxu0 %v2054_v48  ;;  %v1910_v49 = vpop.xlane.xlu1 %1909 }
 0x89e   : > { %2982 = vrcp.f32 %v1910_v49  ;;  %v2057_v3 = vpack.c.bf16 %v2011_v13, %v2009_v60  ;;  %v2056_v54 = vpack.c.bf16 %v2010_v45, %v2008_v42 }
 0x89f   : > { %v1913_v28 = vpop.xlane.xlu0 %1912 }
 0x8a0   : > { %2088 = vmatprep.subr.bf16.mxu0 %v2057_v3  ;;  %2984 = vrcp.f32 %v1913_v28  ;;  %v2979_v0 = vpop.eup %2978 }
 0x8a1   : > { %v2013_v30 = vmul.f32 %v2979_v0, %v3936_v35  ;;  %v2012_v5 = vmul.f32 %v2979_v0, %v3934_v46 }
 0x8a3   : > { %v2981_v21 = vpop.eup %2980 }
 0x8a4   : > { %v2015_v26 = vmul.f32 %v2981_v21, %v3944_v6  ;;  %v2014_v29 = vmul.f32 %v2981_v21, %v3938_v39  ;;  %v4437_v6 = vld [vmem:[#allocation36_spill] sm:$0xff] }
 0x8a5   : > { %2089 = vmatpush1.bf16.xpose.msra.mxu0 %v2056_v54  ;;  %v1916_v47 = vpop.xlane.xlu1 %1915 }
 0x8a6   : > { %2986 = vrcp.f32 %v1916_v47  ;;  %v2059_v61 = vpack.c.bf16 %v2015_v26, %v2013_v30  ;;  %v2058_v56 = vpack.c.bf16 %v2014_v29, %v2012_v5 }
 0x8a7   : > { %v1919_v57 = vpop.xlane.xlu0 %1918 }
 0x8a8   : > { %v2983_v16 = vpop.eup %2982  ;;  %2090 = vmatprep.subr.bf16.mxu0 %v2059_v61  ;;  %2988 = vrcp.f32 %v1919_v57 }
 0x8a9   : > { %v2017_v62 = vmul.f32 %v2983_v16, %v3952_v12  ;;  %v2016_v39 = vmul.f32 %v2983_v16, %v4438_v18  ;;  %v4443_v18 = vmov 0  }
 0x8aa   : > { %v2985_v43 = vpop.eup %2984 }
 0x8ab   : > { %v2019_v9 = vmul.f32 %v2985_v43, %v4436_v38  ;;  %v2018_v7 = vmul.f32 %v2985_v43, %v4437_v6 }
 0x8ad   : > { %2091 = vmatpush1.bf16.xpose.msra.mxu0 %v2058_v56  ;;  %v2061_v35 = vpack.c.bf16 %v2019_v9, %v2017_v62  ;;  %v2060_v53 = vpack.c.bf16 %v2018_v7, %v2016_v39 }
 0x8af   : > { %2092 = vmatprep.subr.bf16.mxu0 %v2061_v35 }
 0x8b0   : > { %v2987_v44 = vpop.eup %2986 }
 0x8b1   : > { %v2021_v22 = vmul.f32 %v2987_v44, %v4439_v63  ;;  %v2020_v31 = vmul.f32 %v2987_v44, %v4442_v25 }
 0x8b2   : > { %v2989_v10 = vpop.eup %2988 }
 0x8b3   : > { %v2023_v46 = vmul.f32 %v2989_v10, %v4440_v41  ;;  %v2022_v12 = vmul.f32 %v2989_v10, %v4441_v2 }
 0x8b5   : > { %2093 = vmatpush1.bf16.xpose.msra.mxu0 %v2060_v53  ;;  %v2063_v33 = vpack.c.bf16 %v2023_v46, %v2021_v22  ;;  %v2062_v48 = vpack.c.bf16 %v2022_v12, %v2020_v31  ;;  %v4444_v12 = vld [vmem:[#allocation25_spill] sm:$0xff] }
 0x8b7   : > { %2094 = vmatprep.subr.bf16.mxu0 %v2063_v33 }
 0x8bd   : > { %2095 = vmatpush1.bf16.xpose.msra.mxu0 %v2062_v48  ;;  %v4445_v48 = vld [vmem:[#allocation26_spill] sm:$0xff] }
 0x8f1   : > { %v1922_v24 = vpop.xlane.xlu1 %1921 }
 0x8f2   : > { %2990 = vrcp.f32 %v1922_v24 }
 0x8f4   : > { %v1925_v8 = vpop.xlane.xlu0 %1924 }
 0x8f5   : > { %2992 = vrcp.f32 %v1925_v8 }
 0x8f9   : > { %v1928_v60 = vpop.xlane.xlu1 %1927 }
 0x8fa   : > { %2994 = vrcp.f32 %v1928_v60 }
 0x8fc   : > { %v2991_v59 = vpop.eup %2990 }
 0x8fd   : > { %v1931_v13 = vpop.xlane.xlu0 %1930  ;;  %v2025_v3 = vmul.f32 %v2991_v59, %v3988_v19  ;;  %v2024_v45 = vmul.f32 %v2991_v59, %v3986_v37 }
 0x8fe   : > { %2996 = vrcp.f32 %v1931_v13  ;;  %v2174_v13 = vld [vmem:[%s4261_s11] sm:$0xf] }
 0x8ff   : > { %v2993_v49 = vpop.eup %2992 }
 0x900   : > { %v2027_v14 = vmul.f32 %v2993_v49, %v3996_v36  ;;  %v2026_v28 = vmul.f32 %v2993_v49, %v3994_v1 }
 0x901   : > { %v1934_v58 = vpop.xlane.xlu1 %1933 }
 0x902   : > { %v2065_v42 = vpack.c.bf16 %v2027_v14, %v2025_v3  ;;  %v2064_v0 = vpack.c.bf16 %v2026_v28, %v2024_v45  ;;  %2998 = vrcp.f32 %v1934_v58 }
 0x904   : > { %2096 = vmatprep.subr.bf16.mxu0 %v2065_v42  ;;  %v2995_v21 = vpop.eup %2994 }
 0x905   : > { %2097 = vmatpush1.bf16.xpose.msra.mxu0 %v2064_v0  ;;  %v2029_v47 = vmul.f32 %v2995_v21, %v4008_v23  ;;  %v2028_v36 = vmul.f32 %v2995_v21, %v4006_v15 }
 0x906   : > { %v1937_v54 = vpop.xlane.xlu0 %1936 }
 0x907   : > { %3000 = vrcp.f32 %v1937_v54 }
 0x908   : > { %v2997_v30 = vpop.eup %2996 }
 0x909   : > { %v1940_v26 = vpop.xlane.xlu1 %1939  ;;  %v2031_v19 = vmul.f32 %v2997_v30, %v4016_v11  ;;  %v2030_v37 = vmul.f32 %v2997_v30, %v4014_v51 }
 0x90a   : > { %3002 = vrcp.f32 %v1940_v26 }
 0x90b   : > { %v2067_v1 = vpack.c.bf16 %v2031_v19, %v2029_v47  ;;  %v2066_v61 = vpack.c.bf16 %v2030_v37, %v2028_v36 }
 0x90c   : > { %v2999_v16 = vpop.eup %2998 }
 0x90d   : > { %v1201_v29 = vpop.permute.xlu1 %1200  ;;  %2098 = vmatprep.subr.bf16.mxu0 %v2067_v1  ;;  %v2033_v23 = vmul.f32 %v2999_v16, %v4028_v4  ;;  %v2032_v15 = vmul.f32 %v2999_v16, %v4026_v50  ;;  %v4446_v1 = vld [vmem:[#allocation27_spill] sm:$0xff] }
 0x90e   : > { %v1943_v57 = vpop.xlane.xlu0 %1942  ;;  %v1271_v5 = vadd.f32 %v4067_v55, %v1201_v29  ;;  %2099 = vmatpush1.bf16.xpose.msra.mxu0 %v2066_v61  ;;  %v1269_v50 = vadd.f32 %v4065_v17, %v1201_v29  ;;  %v4447_v29 = vld [vmem:[#allocation28_spill] sm:$0xff] }
 0x90f   : > { %3004 = vrcp.f32 %v1943_v57 }
 0x910   : > { %v1312_v56 = vpack.c.bf16 %v1271_v5, %v1271_v5 }
 0x911   : > { %v3001_v43 = vpop.eup %3000  ;;  %v2181_v49 = vpop.permute.xlu1 %2180 }
 0x912   : > { %v2035_v11 = vmul.f32 %v3001_v43, %v4034_v40  ;;  %v2034_v51 = vmul.f32 %v3001_v43, %v4032_v20  ;;  %2104 = vmatprep.mubr.bf16.mxu0 %v1312_v56  ;;  %v1311_v20 = vpack.c.bf16 %v1269_v50, %v1269_v50  ;;  %v4451_v50 = vld [vmem:[#allocation16_spill] sm:$0xff] }
 0x914   : > { %v2069_v62 = vpack.c.bf16 %v2035_v11, %v2033_v23  ;;  %v2068_v38 = vpack.c.bf16 %v2034_v51, %v2032_v15  ;;  %v3003_v9 = vpop.eup %3002 }
 0x915   : > { %v2037_v55 = vmul.f32 %v3003_v9, %v4044_v34  ;;  %v2036_v7 = vmul.f32 %v3003_v9, %v4042_v32  ;;  %v1126_v37 = vpop.permute.xlu1 %1125 }
 0x916   : > { %2100 = vmatprep.subr.bf16.mxu0 %v2069_v62  ;;  %v2120_v17 = vpop.permute.xlu0 %2119  ;;  %v1172_v61 = vadd.f32 %v4446_v1, %v1126_v37  ;;  %v1174_v57 = vadd.f32 %v4447_v29, %v1126_v37 }
 0x917   : > { %2101 = vmatpush1.bf16.xpose.msra.mxu0 %v2068_v38 }
 0x918   : > { %v1178_v16 = vmax.f32 %v1172_v61, 0.0  ;;  %v1179_v43 = vmax.f32 %v1174_v57, 0.0 }
 0x919   : > { %v3005_v35 = vpop.eup %3004 }
 0x91a   : > { %v2039_v6 = vmul.f32 %v3005_v35, %v4050_v52  ;;  %v2038_v4 = vmul.f32 %v3005_v35, %v4048_v27  ;;  %v2113_v27 = vld [vmem:[%s4259_s9] sm:$0xf] }
 0x91c   : > { %v2071_v40 = vpack.c.bf16 %v2039_v6, %v2037_v55  ;;  %v2070_v44 = vpack.c.bf16 %v2038_v4, %v2036_v7  ;;  %v4448_v55 = vld [vmem:[#allocation11_spill] sm:$0xff]  ;;  %v4449_v7 = vld [vmem:[#allocation14_spill] sm:$0xff] }
 0x91e   : > { %2102 = vmatprep.subr.bf16.mxu0 %v2071_v40  ;;  %v4450_v40 = vld [vmem:[#allocation13_spill] sm:$0xff] }
 0x91f   : > { %2103 = vmatpush1.bf16.xpose.msra.mxu0 %v2070_v44 }
 0x926   : > { %2105 = vmatmul.mubr.bf16.vlgmr.msra.gmra.mrb[16].mxu0 %v1311_v20 }
 0x927   : > { %2224 = vmatprep.mubr.bf16.mxu0 %v4443_v18 }
 0x9f9   : > { %v2106_v39 = vpop.f32.mrb[16].mxu0 }
 0x9fa   : > { %v2114_v10 = vpack.c.bf16 %v2106_v39, %v2106_v39  ;;  %v2108_v53 = vpop.f32.mrb[17].mxu0 }
 0x9fb   : > { %v2115_v34 = vpack.c.bf16 %v2108_v53, %v2108_v53  ;;  %v2110_v63 = vpop.f32.mrb[18].mxu0 }
 0x9fc   : > { %v2126_v52 = vsel %vm740_vm2, %v2114_v10, 0  ;;  %v2111_v32 = vpop.f32.mrb[19].mxu0  ;;  %v4453_v10 = vld [vmem:[#allocation17_spill] sm:$0xff] }
 0x9fd   : > { %2557 = vmatprep.subr.msk.bf16.mxu1 %vm740_vm2, %v2115_v34  ;;  %v4454_v34 = vld [vmem:[#allocation12_spill] sm:$0xff] }
 0x9fe   : > { %2132 = vmatpush1.bf16.msra.mxu1 %v2126_v52 }
 0xa01   : > { %2558 = vmatmul.mubr.msk.bf16.vlgmr.msra.gmra.mrb[68].mxu1 %vm1211_vm5, %v2113_v27  ;;  %v4455_v27 = vld [vmem:[#allocation18_spill] sm:$0xff] }
 0xa02   : > { %2429 = vmatprep.mubr.bf16.mxu1 %v4443_v18  ;;  %v4452_v18 = vld [vmem:[#allocation10_spill] sm:$0xff] }
 0xad4   : > { %v2165_v22 = vpop.f32.mrb[68].mxu1 }
 0xad5   : > { %v2166_v41 = vadd.f32 %v2165_v22, %v2120_v17  ;;  %v2167_v46 = vpop.f32.mrb[69].mxu1  ;;  %v4456_v22 = vld [vmem:[#allocation15_spill] sm:$0xff] }
 0xad6   : > { %v2168_v33 = vadd.f32 %v2167_v46, %v2120_v17  ;;  %v2169_v2 = vpop.f32.mrb[70].mxu1 }
 0xad7   : > { %v2172_v25 = vadd.f32 %v2166_v41, %v4444_v12  ;;  %v2170_v31 = vpop.f32.mrb[71].mxu1  ;;  %v4458_v12 = vld [vmem:[#allocation23_spill] sm:$0xff] }
 0xad8   : > { %v2173_v24 = vadd.f32 %v2168_v33, %v4445_v48  ;;  %v4457_v33 = vld [vmem:[#allocation20_spill] sm:$0xff]  ;;  %v4459_v31 = vld [vmem:[#allocation19_spill] sm:$0xff] }
 0xad9   : > { %v2175_v8 = vpack.c.bf16 %v2172_v25, %v2172_v25 }
 0xada   : > { %v2176_v60 = vpack.c.bf16 %v2173_v24, %v2173_v24 }
 0xadb   : > { %v2187_v59 = vsel %vm740_vm2, %v2175_v8, 0  ;;  %v4461_v8 = vld [vmem:[#allocation22_spill] sm:$0xff] }
 0xadc   : > { %2559 = vmatprep.subr.msk.bf16.mxu0 %vm740_vm2, %v2176_v60 }
 0xadd   : > { %2193 = vmatpush1.bf16.msra.mxu0 %v2187_v59  ;;  %v4462_v59 = vld [vmem:[#allocation24_spill] sm:$0xff] }
 0xae0   : > { %2560 = vmatmul.mubr.msk.bf16.vlgmr.msra.gmra.mrb[20].mxu0 %vm1211_vm5, %v2174_v13 }
 0xbb3   : > { %v2226_v3 = vpop.f32.mrb[20].mxu0 }
 0xbb4   : > { %v2227_v14 = vadd.f32 %v2226_v3, %v2181_v49  ;;  %v2228_v45 = vpop.f32.mrb[21].mxu0 }
 0xbb5   : > { %v2229_v28 = vadd.f32 %v2228_v45, %v2181_v49  ;;  %v2230_v58 = vpop.f32.mrb[22].mxu0  ;;  %v4463_v49 = vld [vmem:[#allocation21_spill] sm:$0xff]  ;;  %v2382_v45 = vld [vmem:[%s4264_s14] sm:$0xff] }
 0xbb6   : > { %v2233_v42 = vsub.f32 0.0, %v2227_v14  ;;  %v2231_v0 = vpop.f32.mrb[23].mxu0 }
 0xbb7   : > { %v2234_v54 = vsub.f32 0.0, %v2229_v28 }
 0xbb8   : > { %v2235_v21 = vmul.f32 1.442695, %v2233_v42 }
 0xbb9   : > { %v2237_v30 = vmul.f32 1.442695, %v2234_v54 }
 0xbba   : > { %3006 = vpow2.f32 %v2235_v21 }
 0xbbb   : > { %3008 = vpow2.f32 %v2237_v30  ;;  %v4464_v30 = vld [vmem:[#allocation8_spill] sm:$0xff] }
 0xbc4   : > { %v3007_v26 = vpop.eup %3006 }
 0xbc5   : > { %v3009_v47 = vpop.eup %3008  ;;  %v2239_v19 = vadd.f32 1.0, %v3007_v26 }
 0xbc6   : > { %v2240_v36 = vadd.f32 1.0, %v3009_v47  ;;  %v4465_v47 = vld [vmem:[#allocation9_spill] sm:$0xff] }
 0xbc7   : > { %3010 = vrcp.f32 %v2239_v19 }
 0xbc8   : > { %3012 = vrcp.f32 %v2240_v36 }
 0xbd1   : > { %v3011_v5 = vpop.eup %3010 }
 0xbd2   : > { %v3013_v56 = vpop.eup %3012  ;;  %v2243_v23 = vmul.f32 %v3011_v5, %v1178_v16 }
 0xbd3   : > { %v2244_v11 = vmul.f32 %v3013_v56, %v1179_v43 }
 0xbd4   : > { %2247 = vrot.lane.b32.xlu0 %v2243_v23, %s4374_s23 }
 0xbd5   : > { %2249 = vrot.lane.b32.xlu1 %v2244_v11, %s4374_s23  ;;  %s4460_s23 = smov 96  }
 0xc46   : > { %v2248_v15 = vpop.permute.xlu0 %2247 }
 0xc47   : > { %v2255_v51 = vsel %vm541_vm4, 0.0, %v2248_v15  ;;  %v2250_v62 = vpop.permute.xlu1 %2249 }
 0xc48   : > { %v2251_v38 = vsel %vm541_vm4, %v2248_v15, %v2250_v62  ;;  %v2256_v9 = vsel %vm541_vm4, %v2250_v62, 0.0  ;;  %2312 = vrot.lane.b32.xlu0 %v2255_v51, %s4375_s1  ;;  %2276 = vrot.lane.b32.xlu1 %v2255_v51, %s4376_s30  ;;  %v2262_v6 = vmul.f32 %v4448_v55, %v2255_v51  ;;  %v2265_v4 = vmul.f32 %v4449_v7, %v2255_v51 }
 0xc49   : > { %v2782_v35 = vpack.i.bf16 %v2256_v9, %v2251_v38  ;;  %v2259_v44 = vmul.f32 %v4450_v40, %v2255_v51  ;;  %v2263_v20 = vmul.f32 %v2251_v38, %v4451_v50  ;;  %v2264_v39 = vmul.f32 %v4452_v18, %v2256_v9 }
 0xc4a   : > { %v2260_v53 = vmul.f32 %v2251_v38, %v4453_v10  ;;  %v2261_v63 = vmul.f32 %v4454_v34, %v2256_v9  ;;  %v2266_v17 = vmul.f32 %v2251_v38, %v4455_v27  ;;  %v2267_v41 = vmul.f32 %v4456_v22, %v2256_v9 }
 0xc4b   : > { %v2792_v52 = vpack.i.bf16 %v2264_v39, %v2263_v20  ;;  %v2268_v2 = vmul.f32 %v4457_v33, %v2255_v51  ;;  %v2269_v25 = vmul.f32 %v2251_v38, %v4458_v12  ;;  %v2270_v48 = vmul.f32 %v4459_v31, %v2256_v9 }
 0xc4c   : > { %2783 = vrot.lane.b32.xlu1 %v2782_v35, %s4368_s0  ;;  %2773 = vrot.lane.b32.xlu0 %v2782_v35, %s4376_s30  ;;  %v2787_v32 = vpack.i.bf16 %v2261_v63, %v2260_v53  ;;  %v2797_v46 = vpack.i.bf16 %v2267_v41, %v2266_v17  ;;  %v2271_v60 = vmul.f32 %v4461_v8, %v2255_v51  ;;  %s2569_s30 = sshll.u32 %s3198_s22, 8 }
 0xc4d   : > { %v2802_v24 = vpack.i.bf16 %v2270_v48, %v2269_v25  ;;  %v2272_v13 = vmul.f32 %v2251_v38, %v4462_v59  ;;  %v2273_v3 = vmul.f32 %v4463_v49, %v2256_v9  ;;  %v2257_v26 = vmul.f32 %v4464_v30, %v2255_v51  ;;  %s4208_s3 = scalar_lea.hbm %s4265_s15, %s2569_s30 }
 0xc4e   : > { %v2258_v19 = vmul.f32 %v4465_v47, %v2251_v38 }
 0xc4f   : > { %v2807_v14 = vpack.i.bf16 %v2272_v13, %v2271_v60 }
 0xc50   : > { %2302 = vrot.lane.b32.xlu1 %v2262_v6, %s4369_s17  ;;  %2778 = vrot.lane.b32.xlu0 %v2782_v35, %s4375_s1 }
 0xc54   : > { %2325 = vrot.lane.b32.xlu1 %v2265_v4, %s4370_s26  ;;  %2289 = vrot.lane.b32.xlu0 %v2259_v44, %s4371_s27 }
 0xc58   : > { %2793 = vrot.lane.b32.xlu1 %v2792_v52, %s4369_s17  ;;  %2788 = vrot.lane.b32.xlu0 %v2787_v32, %s4371_s27  ;;  %s485_s17 = sand.u32 1, %s3070_s19  }
 0xc59   : > { %s2522_s1 = sshll.u32 %s485_s17, 4  ;;  %s2445_s22 = scalar_lea.sflag [#allocation3], %s485_s17 }
 0xc5a   : > { %s487_s20 = scalar_lea.vmem [#allocation2], %s2522_s1 }
 0xc5b   : > { %s2459_s24 = sshll.u32 %s487_s20, 4  ;;  %s4210_s24 = int_to_ptr.vmem [resolvable:$true] %s2459_s24 }
 0xc5c   : > { %2798 = vrot.lane.b32.xlu1 %v2797_v46, %s4370_s26  ;;  %2338 = vrot.lane.b32.xlu0 %v2268_v2, %s4460_s23  ;;  %s3016_s4 = scalar_lea.vmem %s4210_s24, 256 }
 0xc5d   : > { %p3017_p11 = scmp.ne.s32.totalorder %s4210_s24, %s3016_s4 }
 0xc5f   : > { %p3018_p12 = pnand %p3017_p11, %p3215_p5 }
 0xc60   : > { %2348 = vrot.lane.b32.xlu1 %v2255_v51, %s4368_s0  ;;  %2803 = vrot.lane.b32.xlu0 %v2802_v24, %s4460_s23 }
 0xc61   : > { %p3019_p13 = pneg %p3018_p12 }
 0xc64   : > { %2365 = vrot.lane.b32.xlu1 %v2273_v3, %s4377_s2  ;;  %2808 = vrot.lane.b32.xlu0 %v2807_v14, %s4377_s2 }
 0xc68   : > { %2385 = vperm.xlu0 %2731, %v2382_v45   ;;  %v2381_v45 = vld [vmem:[%s4263_s13] sm:$0xf] }
 0xcba   : > { %v2313_v28 = vpop.permute.xlu0 %2312  ;;  %v2277_v58 = vpop.permute.xlu1 %2276 }
 0xcbe   : > { %v2784_v42 = vpop.permute.xlu1 %2783  ;;  %v2774_v0 = vpop.permute.xlu0 %2773 }
 0xcbf   : > { %v2776_v54 = vunpack.i.h.bf16 %v2774_v0  ;;  %v2775_v21 = vunpack.i.l.bf16 %v2774_v0  ;;  %v2786_v18 = vunpack.i.h.bf16 %v2784_v42  ;;  %v2785_v39 = vunpack.i.l.bf16 %v2784_v42 }
 0xcc1   : > { %v2282_v36 = vsel %vm622_vm10, %v2277_v58, %v2775_v21  ;;  %v2283_v37 = vsel %vm622_vm10, %v2775_v21, %v2776_v54  ;;  %v2355_v12 = vsel %vm700_vm15, %v2785_v39, %v2786_v18 }
 0xcc2   : > { %v2371_v1 = vpack.c.bf16 %v2282_v36, %v2257_v26  ;;  %v2303_v61 = vpop.permute.xlu1 %2302  ;;  %v2779_v29 = vpop.permute.xlu0 %2778  ;;  %v2372_v57 = vpack.c.bf16 %v2283_v37, %v2258_v19  ;;  %v3014_v19 = vld [vmem:[%s3230_s25] sm:$0xff]  ;;  %v3015_v37 = vld [vmem:[%s3230_s25 + $0x8] sm:$0xff]  ;;  %s3096_s25 = smov [#allocation2]  }
 0xcc3   : > { %v2781_v62 = vunpack.i.h.bf16 %v2779_v29  ;;  %v2780_v38 = vunpack.i.l.bf16 %v2779_v29  ;;  %s3020_s23 = sshll.u32 %s3096_s25, 4  ;;  %s3021_s23 = int_to_ptr.vmem [resolvable:$false] %s3020_s23 }
 0xcc4   : > { %2397 = vmatprep.subr.bf16.mxu1 %v2372_v57  ;;  %s3022_s27 = scalar_lea.vmem %s3021_s23, 512  ;;  %p3023_p0 = scmp.lt.s32.totalorder %s4210_s24, %s3021_s23 }
 0xcc5   : > { %2398 = vmatpush1.bf16.msra.mxu1 %v2371_v1  ;;  %v2318_v10 = vsel %vm661_vm13, %v2313_v28, %v2780_v38  ;;  %v2319_v34 = vsel %vm661_vm13, %v2780_v38, %v2781_v62  ;;  %p3024_p1 = scmp.lt.s32.totalorder %s3022_s27, %s3016_s4 }
 0xcc6   : > { %v2326_v16 = vpop.permute.xlu1 %2325  ;;  %v2290_v5 = vpop.permute.xlu0 %2289 }
 0xcc7   : > { %p3025_p2 = por %p3024_p1, %p3023_p0 }
 0xcc9   : > { %p3026_p3 = pnand %p3025_p2, %p3019_p13 }
 0xcca   : > { %v2794_v43 = vpop.permute.xlu1 %2793  ;;  %v2789_v56 = vpop.permute.xlu0 %2788 }
 0xccb   : > { %v2796_v23 = vunpack.i.h.bf16 %v2794_v43  ;;  %v2795_v11 = vunpack.i.l.bf16 %v2794_v43  ;;  %v2791_v15 = vunpack.i.h.bf16 %v2789_v56  ;;  %v2790_v51 = vunpack.i.l.bf16 %v2789_v56 }
 0xccd   : > { %v2308_v9 = vsel %vm650_vm11, %v2303_v61, %v2795_v11  ;;  %v2295_v35 = vsel %vm636_vm12, %v2290_v5, %v2790_v51  ;;  %v2296_v55 = vsel %vm636_vm12, %v2790_v51, %v2791_v15  ;;  %v2309_v6 = vsel %vm650_vm11, %v2795_v11, %v2796_v23 }
 0xcce   : > { %v2373_v7 = vpack.c.bf16 %v2308_v9, %v2295_v35  ;;  %v2799_v4 = vpop.permute.xlu1 %2798  ;;  %v2339_v40 = vpop.permute.xlu0 %2338  ;;  %v2374_v44 = vpack.c.bf16 %v2309_v6, %v2296_v55 }
 0xccf   : > { %v2801_v50 = vunpack.i.h.bf16 %v2799_v4  ;;  %v2800_v20 = vunpack.i.l.bf16 %v2799_v4 }
 0xcd0   : > { %2399 = vmatprep.subr.bf16.mxu1 %v2374_v44 }
 0xcd1   : > { %v2331_v53 = vsel %vm675_vm14, %v2326_v16, %v2800_v20  ;;  %2400 = vmatpush1.bf16.msra.mxu1 %v2373_v7  ;;  %v2332_v63 = vsel %vm675_vm14, %v2800_v20, %v2801_v50 }
 0xcd2   : > { %v2375_v52 = vpack.c.bf16 %v2331_v53, %v2318_v10  ;;  %v2349_v32 = vpop.permute.xlu1 %2348  ;;  %v2804_v27 = vpop.permute.xlu0 %2803  ;;  %v2376_v17 = vpack.c.bf16 %v2332_v63, %v2319_v34 }
 0xcd3   : > { %v2806_v22 = vunpack.i.h.bf16 %v2804_v27  ;;  %v2805_v41 = vunpack.i.l.bf16 %v2804_v27  ;;  %v2354_v46 = vsel %vm700_vm15, %v2349_v32, %v2785_v39 }
 0xcd4   : > { %2401 = vmatprep.subr.bf16.mxu1 %v2376_v17 }
 0xcd5   : > { %v2344_v33 = vsel %vm689_vm0, %v2339_v40, %v2805_v41  ;;  %2402 = vmatpush1.bf16.msra.mxu1 %v2375_v52  ;;  %v2345_v2 = vsel %vm689_vm0, %v2805_v41, %v2806_v22 }
 0xcd6   : > { %v2377_v25 = vpack.c.bf16 %v2354_v46, %v2344_v33  ;;  %v2809_v31 = vpop.permute.xlu0 %2808  ;;  %v2378_v48 = vpack.c.bf16 %v2355_v12, %v2345_v2  ;;  %v2366_v60 = vpop.permute.xlu1 %2365 }
 0xcd7   : > { %v2811_v24 = vunpack.i.h.bf16 %v2809_v31  ;;  %v2810_v8 = vunpack.i.l.bf16 %v2809_v31 }
 0xcd8   : > { %2403 = vmatprep.subr.bf16.mxu1 %v2378_v48 }
 0xcd9   : > { %v2368_v59 = vsel %vm714_vm1, %v2811_v24, %v2366_v60  ;;  %2404 = vmatpush1.bf16.msra.mxu1 %v2377_v25  ;;  %v2367_v13 = vsel %vm714_vm1, %v2810_v8, %v2811_v24 }
 0xcda   : > { %v2380_v49 = vpack.c.bf16 %v2368_v59, %v2368_v59  ;;  %v2379_v3 = vpack.c.bf16 %v2367_v13, %v2367_v13 }
 0xcdc   : > { %2561 = vmatprep.subr.msk.bf16.mxu1 %vm740_vm2, %v2380_v49  ;;  %v2392_v14 = vsel %vm740_vm2, %v2379_v3, 0 }
 0xcdd   : > { %2406 = vmatpush1.bf16.msra.mxu1 %v2392_v14 }
 0xce0   : > { %2562 = vmatmul.mubr.msk.bf16.vlgmr.msra.gmra.mrb[72].mxu1 %vm736_vm3, %v2381_v45 }
 0xce7   : > { %v2386_v28 = vpop.permute.xlu0 %2385 }
 0xdb3   : > { %v2431_v58 = vpop.f32.mrb[72].mxu1 }
 0xdb4   : > { %v2432_v42 = vadd.f32 %v2431_v58, %v2386_v28  ;;  %v2433_v0 = vpop.f32.mrb[73].mxu1 }
 0xdb5   : > { %v2434_v54 = vadd.f32 %v2433_v0, %v2386_v28  ;;  %v2435_v21 = vpop.f32.mrb[74].mxu1 }
 0xdb6   : > { %v2438_v30 = vmax.f32 %v2432_v42, 0.0  ;;  %v2436_v26 = vpop.f32.mrb[75].mxu1 }
 0xdb7   : > { %v2439_v47 = vmax.f32 %v2434_v54, 0.0 }
 0xdb8   : > { %v2440_v36 = vadd.f32 %v3014_v19, %v2438_v30 }
 0xdb9   : > { %v2441_v1 = vadd.f32 %v3015_v37, %v2439_v47 }
 0xdba   : > { %2442 = vst [vmem:[%s487_s20] sm:$0xff] %v2440_v36 }
 0xdbb   : > { %2443 = vst [vmem:[%s487_s20 + $0x8] sm:$0xff] %v2441_v1 }
 0xdbc   : > { %3029 = shalt.err (!%p3026_p3)
}
 0xdbd   : > { %s3030_s26 = scalar_lea.hbm %s4208_s3, 256  ;;  %s3034_s17 = scalar_lea.hbm %s4265_s15, 512 }
 0xdbe   : > { %p3031_p4 = scmp.ne.s32.totalorder %s4208_s3, %s3030_s26  ;;  %p3035_p9 = scmp.lt.u32.totalorder %s4208_s3, %s4265_s15 }
 0xdbf   : > { %p3036_p10 = scmp.lt.u32.totalorder %s3034_s17, %s3030_s26  ;;  %p3038_p12 = scmp.lt.u32.totalorder %s3030_s26, %s4208_s3 }
 0xdc0   : > { %p3032_p7 = pnand %p3031_p4, %p3215_p5 }
 0xdc1   : > { %p3037_p11 = por %p3036_p10, %p3035_p9 }
 0xdc2   : > { %p3033_p8 = pneg %p3032_p7 }
 0xdc3   : > { %p3039_p13 = por %p3038_p12, %p3037_p11 }
 0xdc5   : > { %p3040_p0 = pnand %p3039_p13, %p3033_p8 }
 0xdc7   : > { %3043 = shalt.err (!%p3040_p0)
}
 0xdc8   : > { %2570 = dma.vmem_to_hbm [thread:$0]  (%p3215_p5), %s4210_s24, 256, %s4208_s3, %s2445_s22  }
 0xdc9 PF: > { %p2576_p1 = scmp.ge.s32.totalorder %s3078_s21, 2  ;;  %s2471_s20 = sand.u32 1, %s3066_s18  }
 0xdca   : > { %s2472_s5 = scalar_lea.sflag [#allocation3], %s2471_s20 }
 0xdcb   : > { %p2573_p2 = pnand %p2576_p1, %p3219_p6 }
 0xdcd   : > { %3061 = dma.done.wait (!%p2573_p2), %s2472_s5, 256  }
 0xdce   : > { %3063 = vsyncadd (!%p2573_p2), %s2472_s5, 4294967040  ;;  %s4466_s21 = sld [smem:[#allocation6_spill]]  ;;  %s4467_s16 = sld [smem:[#allocation5_spill]] }
 0xdcf   : > { %s4468_s20 = sld [smem:[#allocation7_spill]]  ;;  %s4469_s18 = smov %s3070_s19 }
 0xdd4   : > { %p25_p3 = scmp.ge.s32.totalorder %s4466_s21, 4   ;;  %s4470_s19 = smov %s4467_s16 }
 0xdd6   :  { %27 = sbr.rel (!%p25_p3) target bundleno = 10 (0xa), region = 115 }
 0xddd   :  { %2477 = vsyncpa [#allocation3], 1 }
 0xdde   :  { %2479 = vsyncpa [#allocation3 + $0x1], 1 }

</bundles_post_ra>
